<compile_context>
chip_gen: v6e
topology: v6e:2x2x1
jax: 0.10.0
libtpu: 0.0.40
codegen_flags: <defaults>
</compile_context>

<pallas_src>
import functools
import warnings
from typing import NamedTuple

import jax
import jax.numpy as jnp
import numpy as np
from jax import lax
from jax.experimental import pallas as pl
from jax.experimental.pallas import tpu as pltpu

NUM_CHARS = 256
PAD_CHAR = 0


class Config(NamedTuple):
    H: int
    W: int
    blstats_size: int
    num_actions: int
    hidden_dim: int
    embedding_dim: int
    crop_dim: int
    num_layers: int
    msg_hdim: int
    msg_edim: int
    msg_len: int
    num_glyphs: int
    num_chars: int


# ----------------------------------------------------------------------------
# Fused MLP Pallas kernel (shared by all dense chains of the model)
# ----------------------------------------------------------------------------
def _round_up(x, m):
    return ((x + m - 1) // m) * m


def _default_tm():
    """Row tile default: 128 on v5e (4x128x128 MXU), 256 on v6e/v7x (2x256x256)."""
    try:
        kind = jax.devices()[0].device_kind.lower()
        if "v5 lite" in kind or "v5e" in kind or "v5lite" in kind:
            return 128
    except Exception:  # pragma: no cover
        pass
    return 256


@functools.lru_cache(maxsize=1)
def _single_buffer_supported():
    """Probe whether pipeline_mode=pl.Buffered(1) lowers & runs on this jax/TPU.

    Resident weight blocks never change block index, so single-buffering halves
    their VMEM footprint.  If unsupported we warn LOUDLY (the VMEM budget
    changes) and use the default double-buffering instead -- no silent
    behaviour change at full scale.
    """
    try:
        spec = pl.BlockSpec((8, 128), lambda i: (0, 0),
                            pipeline_mode=pl.Buffered(1))

        def probe(w_ref, o_ref):
            o_ref[...] = w_ref[...] + 1.0

        out = pl.pallas_call(
            probe,
            out_shape=jax.ShapeDtypeStruct((16, 128), jnp.float32),
            grid_spec=pltpu.PrefetchScalarGridSpec(
                num_scalar_prefetch=0, grid=(2,),
                in_specs=[spec],
                out_specs=pl.BlockSpec((8, 128), lambda i: (i, 0))),
        )(jnp.zeros((8, 128), jnp.float32))
        jax.block_until_ready(out)
        return True
    except Exception as e:  # noqa: BLE001
        warnings.warn(
            "pl.Buffered(1) weight BlockSpecs are not supported here "
            f"({type(e).__name__}); resident MLP weights will be "
            "double-buffered (2x their VMEM footprint).")
        return False


def _resident_spec(shape):
    """Whole-array block, same block at every (i, k) grid step, single-buffered."""
    index_map = lambda i, k: (0,) * len(shape)
    if _single_buffer_supported():
        return pl.BlockSpec(shape, index_map, pipeline_mode=pl.Buffered(1))
    return pl.BlockSpec(shape, index_map)


def _pick_row_tile(m, tm):
    """Row tile from {tm, tm/2, ..., 8}.

    Pick the biggest tile whose row-padding waste is <= 12.5% of M, otherwise
    the one that minimizes padding (ties -> bigger tile).  Then, if it gives a
    single row grid step and can be halved, halve it so the "parallel" row axis
    has >=2 steps to shard across v7x's two TensorCores.
    """
    tm = max(8, _round_up(tm, 8))
    cands = []
    t = tm
    while True:
        cands.append(t)
        if t <= 8:
            break
        t = max(8, (t // 2) // 8 * 8)
    best = None
    for t in cands:                         # biggest first
        if _round_up(m, t) - m <= m // 8:
            best = t
            break
    if best is None:
        best = min(cands, key=lambda t: (_round_up(m, t), -t))
    if _round_up(m, best) // best == 1 and best >= 16:
        best = max(8, (best // 2) // 8 * 8)
    return best


def fused_mlp_pallas(x, layers, relu_flags, *, tm=None, k_tile=512,
                     k_tile_threshold=2048, aux_output=None,
                     out_dtype=jnp.float32):
    """Fused chain of Linear(+ReLU) layers as one Pallas TPU kernel.

    x:          (M, d_in) activations (rows = flattened T*B).
    layers:     sequence of (W, b); W is (d_in, d_out), b is (1, d_out).
                Weights may be float32 or bfloat16 -- matmuls always
                accumulate in float32 on the MXU (preferred_element_type).
    relu_flags: per-layer bool, apply ReLU after that layer.
    aux_output: optionally also emit the post-activation of this layer index
                as a second output (used to fuse trunk + heads: heads are the
                final output, the fc2 hidden is the aux output).

    Tiling:
      * rows tiled with a padding-aware tile (see _pick_row_tile),
      * the FIRST layer's d_in is K-tiled (second, "arbitrary" grid axis with
        an f32 VMEM accumulator) whenever d_in > k_tile_threshold, so the big
        fc1 weight is streamed in (k_tile, d_out) chunks instead of being held
        resident (it cannot fit v7x's 64 MiB VMEM at real NetHack scale),
      * all remaining (small) weights stay VMEM-resident, single-buffered when
        the platform supports pl.Buffered(1).
    """
    M, d_in = x.shape
    num_layers = len(layers)
    relu_flags = tuple(relu_flags)
    assert len(relu_flags) == num_layers
    assert aux_output is None or 0 <= aux_output < num_layers - 1
    dims_out = [w.shape[1] for w, _ in layers]
    out_dim = dims_out[-1]
    if tm is None:
        tm = _default_tm()

    # bf16 weights -> stream bf16 activations too (halves the dominant input
    # HBM read and the double-buffered input-tile VMEM; accumulation stays f32
    # and matches the reference, which casts at the dot anyway).
    if layers[0][0].dtype == jnp.bfloat16 and x.dtype == jnp.float32:
        x = x.astype(jnp.bfloat16)

    tm_eff = _pick_row_tile(M, tm)
    m_pad = _round_up(M, tm_eff)

    w0, b0 = layers[0]
    if d_in > k_tile_threshold:
        tk_eff = _round_up(k_tile, 128)
        k_steps = int(pl.cdiv(d_in, tk_eff))
        d_in_pad = k_steps * tk_eff
    else:
        tk_eff = d_in
        k_steps = 1
        d_in_pad = d_in

    if (m_pad, d_in_pad) != (M, d_in):
        x = jnp.pad(x, ((0, m_pad - M), (0, d_in_pad - d_in)))
    if d_in_pad != d_in:
        w0 = jnp.pad(w0, ((0, d_in_pad - d_in), (0, 0)))

    grid = (m_pad // tm_eff, k_steps)
    n_out = 1 if aux_output is None else 2

    def kernel(x_ref, *refs):
        acc_ref = refs[-1]
        w_refs = [refs[2 * l] for l in range(num_layers)]
        b_refs = [refs[2 * l + 1] for l in range(num_layers)]
        out_refs = refs[2 * num_layers: 2 * num_layers + n_out]
        k = pl.program_id(1)

        @pl.when(k == 0)
        def _():
            acc_ref[...] = jnp.zeros_like(acc_ref)

        w0v = w_refs[0][...]
        acc_ref[...] += jnp.dot(x_ref[...].astype(w0v.dtype), w0v,
                                preferred_element_type=jnp.float32)

        @pl.when(k == pl.num_programs(1) - 1)
        def _():
            h = acc_ref[...] + b_refs[0][...].astype(jnp.float32)
            if relu_flags[0]:
                h = jnp.maximum(h, 0.0)
            if aux_output == 0:
                out_refs[1][...] = h.astype(out_refs[1].dtype)
            for l in range(1, num_layers):
                wv = w_refs[l][...]
                h = jnp.dot(h.astype(wv.dtype), wv,
                            preferred_element_type=jnp.float32)
                h = h + b_refs[l][...].astype(jnp.float32)
                if relu_flags[l]:
                    h = jnp.maximum(h, 0.0)
                if aux_output == l:
                    out_refs[1][...] = h.astype(out_refs[1].dtype)
            out_refs[0][...] = h.astype(out_refs[0].dtype)

    in_specs = [pl.BlockSpec((tm_eff, tk_eff), lambda i, k: (i, k))]
    operands = [x]
    if k_steps > 1:
        # Streamed first-layer weight: block index follows the K axis.
        in_specs.append(pl.BlockSpec((tk_eff, dims_out[0]),
                                     lambda i, k: (k, 0)))
    else:
        in_specs.append(_resident_spec(w0.shape))
    operands.append(w0)
    in_specs.append(_resident_spec(b0.shape))
    operands.append(b0)
    for w, b in layers[1:]:
        in_specs.append(_resident_spec(w.shape))
        operands.append(w)
        in_specs.append(_resident_spec(b.shape))
        operands.append(b)

    out_shapes = [jax.ShapeDtypeStruct((m_pad, out_dim), out_dtype)]
    out_specs = [pl.BlockSpec((tm_eff, out_dim), lambda i, k: (i, 0))]
    if aux_output is not None:
        aux_dim = dims_out[aux_output]
        out_shapes.append(jax.ShapeDtypeStruct((m_pad, aux_dim), out_dtype))
        out_specs.append(pl.BlockSpec((tm_eff, aux_dim), lambda i, k: (i, 0)))

    # --- cost estimate + per-call VMEM budget derived from actual footprint ---
    x_itemsize = np.dtype(x.dtype).itemsize
    out_itemsize = np.dtype(out_dtype).itemsize
    buf = 1 if _single_buffer_supported() else 2

    flops = 2 * m_pad * d_in_pad * dims_out[0]
    param_bytes = w0.size * w0.dtype.itemsize + b0.size * b0.dtype.itemsize
    vmem = 2 * tm_eff * tk_eff * x_itemsize                   # input tiles (x2)
    if k_steps > 1:
        vmem += 2 * tk_eff * dims_out[0] * w0.dtype.itemsize  # streamed w0 (x2)
        vmem += b0.size * b0.dtype.itemsize * buf
    else:
        vmem += (w0.size * w0.dtype.itemsize
                 + b0.size * b0.dtype.itemsize) * buf
    for w, b in layers[1:]:
        flops += 2 * m_pad * w.shape[0] * w.shape[1]
        param_bytes += w.size * w.dtype.itemsize + b.size * b.dtype.itemsize
        vmem += (w.size * w.dtype.itemsize + b.size * b.dtype.itemsize) * buf
    out_bytes = m_pad * out_dim * out_itemsize
    vmem += 2 * tm_eff * out_dim * out_itemsize
    if aux_output is not None:
        out_bytes += m_pad * dims_out[aux_output] * out_itemsize
        vmem += 2 * tm_eff * dims_out[aux_output] * out_itemsize
    vmem += tm_eff * dims_out[0] * 4                          # f32 accumulator
    bytes_accessed = int(x.size * x_itemsize + param_bytes + out_bytes)
    vmem_limit = int(min(max(vmem * 5 // 4 + (2 << 20), 8 << 20), 120 << 20))

    outs = pl.pallas_call(
        kernel,
        out_shape=tuple(out_shapes) if n_out > 1 else out_shapes[0],
        grid_spec=pltpu.PrefetchScalarGridSpec(
            num_scalar_prefetch=0,
            grid=grid,
            in_specs=in_specs,
            out_specs=tuple(out_specs) if n_out > 1 else out_specs[0],
            scratch_shapes=[pltpu.VMEM((tm_eff, dims_out[0]), jnp.float32)]),
        compiler_params=pltpu.CompilerParams(
            dimension_semantics=("parallel", "arbitrary"),
            vmem_limit_bytes=vmem_limit),
        cost_estimate=pl.CostEstimate(
            flops=flops, transcendentals=0, bytes_accessed=bytes_accessed),
    )(*operands)

    if n_out == 1:
        return outs[:M] if m_pad != M else outs
    final, aux = outs
    if m_pad != M:
        final, aux = final[:M], aux[:M]
    return final, aux


def fused_mlp_ref(x, layers, relu_flags, *, aux_output=None,
                  out_dtype=jnp.float32):
    """Pure-JAX reference with the same dtype semantics as the kernel."""
    h = x
    aux = None
    for l, ((w, b), relu) in enumerate(zip(layers, relu_flags)):
        h = (jnp.dot(h.astype(w.dtype), w, preferred_element_type=jnp.float32)
             + b.astype(jnp.float32))
        if relu:
            h = jnp.maximum(h, 0.0)
        if aux_output == l:
            aux = h
    h = h.astype(out_dtype)
    if aux_output is None:
        return h
    return h, aux.astype(out_dtype)


# ----------------------------------------------------------------------------
# Plain-JAX building blocks (conv stacks, crop, pooling)
# TODO(synk): these run as XLA ops, not Pallas kernels.
# ----------------------------------------------------------------------------
def _conv2d(x, wb):
    w, b = wb
    y = lax.conv_general_dilated(x, w, window_strides=(1, 1),
                                 padding=((1, 1), (1, 1)),
                                 dimension_numbers=("NCHW", "OIHW", "NCHW"))
    return y + b[None, :, None, None]


def _conv_stack(x, layers):
    for wb in layers:
        x = jax.nn.elu(_conv2d(x, wb))
    return x


def _conv1d(x, wb):
    w, b = wb
    y = lax.conv_general_dilated(x, w, window_strides=(1,), padding="VALID",
                                 dimension_numbers=("NCH", "OIH", "NCH"))
    return y + b[None, :, None]


def _maxpool1d(x, k, s):
    return lax.reduce_window(x, -jnp.inf, lax.max,
                             window_dimensions=(1, 1, k),
                             window_strides=(1, 1, s), padding="VALID")


def _crop_glyphs(glyphs, coords, H, W, crop_dim):
    """Centered crop_dim x crop_dim window around integer (x, y) coordinates.

    Matches Crop/F.grid_sample(bilinear, align_corners=True) + round for odd
    H, W and integer coordinates (the NetHack case): PyTorch's
    _step_to_range uses arange(-num_steps//2, num_steps//2) = -5..3 for
    crop_dim=9, i.e. the same (intentionally asymmetric) window used here.
    Out-of-bounds samples -> 0 (padding_mode='zeros').
    TODO(synk): non-integer coords / even H,W would need true bilinear.
    """
    M = glyphs.shape[0]
    offs = jnp.arange((-crop_dim) // 2, crop_dim // 2)        # e.g. -5..3
    x = jnp.round(coords[:, 0]).astype(jnp.int32)             # width coordinate
    y = jnp.round(coords[:, 1]).astype(jnp.int32)             # height coordinate
    px = x[:, None] + offs[None, :]                           # (M, cd)
    py = y[:, None] + offs[None, :]                           # (M, cd)
    valid = ((py[:, :, None] >= 0) & (py[:, :, None] < H) &
             (px[:, None, :] >= 0) & (px[:, None, :] < W))    # (M, cd, cd)
    pyc = jnp.clip(py, 0, H - 1)
    pxc = jnp.clip(px, 0, W - 1)
    vals = glyphs[jnp.arange(M)[:, None, None],
                  pyc[:, :, None], pxc[:, None, :]]
    return jnp.where(valid, vals, 0)


# ----------------------------------------------------------------------------
# Parameters
# ----------------------------------------------------------------------------
def make_params(key, cfg):
    K = cfg.embedding_dim
    M_CH, Y = 16, 8
    L = cfg.num_layers
    in_ch = [K] + [M_CH] * (L - 1)
    out_ch = [M_CH] * (L - 1) + [Y]

    keys = iter(jax.random.split(key, 64))

    def linear(din, dout):
        w = jax.random.normal(next(keys), (din, dout), jnp.float32) / (din ** 0.5)
        return w, jnp.zeros((1, dout), jnp.float32)

    def conv2d_p(cin, cout, k):
        w = (jax.random.normal(next(keys), (cout, cin, k, k), jnp.float32)
             / ((cin * k * k) ** 0.5))
        return w, jnp.zeros((cout,), jnp.float32)

    def conv1d_p(cin, cout, k):
        w = (jax.random.normal(next(keys), (cout, cin, k), jnp.float32)
             / ((cin * k) ** 0.5))
        return w, jnp.zeros((cout,), jnp.float32)

    params = {}
    params["glyph_embed"] = jax.random.normal(
        next(keys), (cfg.num_glyphs, K), jnp.float32)
    params["conv_full"] = [conv2d_p(in_ch[i], out_ch[i], 3) for i in range(L)]
    params["conv_crop"] = [conv2d_p(in_ch[i], out_ch[i], 3) for i in range(L)]
    params["blstats_w1"], params["blstats_b1"] = linear(cfg.blstats_size, K)
    params["blstats_w2"], params["blstats_b2"] = linear(K, K)
    char_embed = jax.random.normal(
        next(keys), (cfg.num_chars, cfg.msg_edim), jnp.float32)
    params["char_embed"] = char_embed.at[PAD_CHAR].set(0.0)   # padding_idx=0
    params["msg_conv"] = ([conv1d_p(cfg.msg_edim, cfg.msg_hdim, 7),
                           conv1d_p(cfg.msg_hdim, cfg.msg_hdim, 7)]
                          + [conv1d_p(cfg.msg_hdim, cfg.msg_hdim, 3)
                             for _ in range(4)])
    params["msg_fc_w1"], params["msg_fc_b1"] = linear(5 * cfg.msg_hdim,
                                                      2 * cfg.msg_hdim)
    params["msg_fc_w2"], params["msg_fc_b2"] = linear(2 * cfg.msg_hdim,
                                                      cfg.msg_hdim)

    out_dim = (K + cfg.H * cfg.W * Y + cfg.crop_dim ** 2 * Y
               + 2 * cfg.msg_hdim)                            # msg + goal reps
    params["fc1_w"], params["fc1_b"] = linear(out_dim, cfg.hidden_dim)
    params["fc2_w"], params["fc2_b"] = linear(cfg.hidden_dim, cfg.hidden_dim)
    params["policy_w"], params["policy_b"] = linear(cfg.hidden_dim,
                                                    cfg.num_actions)
    params["baseline_w"], params["baseline_b"] = linear(cfg.hidden_dim, 1)
    # Fused policy+baseline head, concatenated ONCE here instead of per step.
    params["head_w"] = jnp.concatenate(
        [params["policy_w"], params["baseline_w"]], axis=1)
    params["head_b"] = jnp.concatenate(
        [params["policy_b"], params["baseline_b"]], axis=1)
    return params


_MLP_WEIGHT_KEYS = ("blstats_w1", "blstats_w2", "msg_fc_w1", "msg_fc_w2",
                    "fc1_w", "fc2_w", "head_w")


def cast_mlp_weights(params, dtype):
    """bf16 weights for the MXU (biases & accumulation stay f32)."""
    out = dict(params)
    for k in _MLP_WEIGHT_KEYS:
        out[k] = params[k].astype(dtype)
    return out


# ----------------------------------------------------------------------------
# NetHackPolicyNet forward (use_lstm=False, goal_conditioned=True, eval mode)
# ----------------------------------------------------------------------------
def nethack_policy_forward(params, env_outputs, goal, core_state, cfg,
                           *, use_pallas=True, tm=None):
    glyphs = env_outputs["glyphs"]
    blstats = env_outputs["blstats"]
    message = env_outputs["message"]
    T, B = glyphs.shape[:2]
    M = T * B

    mlp = (functools.partial(fused_mlp_pallas, tm=tm) if use_pallas
           else fused_mlp_ref)

    glyphs = glyphs.reshape(M, cfg.H, cfg.W).astype(jnp.int32)
    blstats = blstats.reshape(M, -1).astype(jnp.float32)
    coords = blstats[:, :2]                                   # (x, y)

    # --- blstats embedding (fused Pallas MLP) ---
    blstats_emb = mlp(blstats,
                      ((params["blstats_w1"], params["blstats_b1"]),
                       (params["blstats_w2"], params["blstats_b2"])),
                      (True, True))

    # --- cropped glyph representation ---
    crop = _crop_glyphs(glyphs, coords, cfg.H, cfg.W, cfg.crop_dim)
    crop_emb = jnp.swapaxes(params["glyph_embed"][crop], 1, 3)      # (M,K,cd,cd)
    crop_rep = _conv_stack(crop_emb, params["conv_crop"]).reshape(M, -1)

    # --- full glyph map representation ---
    glyphs_emb = jnp.swapaxes(params["glyph_embed"][glyphs], 1, 3)  # (M,K,W,H)
    glyphs_rep = _conv_stack(glyphs_emb, params["conv_full"]).reshape(M, -1)

    # --- message + goal representation ('lt_cnn'): both sequences stacked so
    #     the conv stack and the FC tail each run ONCE on 2M rows (msg FC
    #     weights loaded once, one fewer kernel launch + HBM round trip) ---
    msgs = jnp.concatenate(
        [message.reshape(M, -1), goal.reshape(M, -1)], axis=0).astype(jnp.int32)
    h = jnp.swapaxes(params["char_embed"][msgs], 1, 2)              # (2M,E,L)
    h = _conv1d(h, params["msg_conv"][0])
    h = _maxpool1d(jnp.maximum(h, 0.0), 3, 3)
    h = _conv1d(h, params["msg_conv"][1])
    h = _maxpool1d(jnp.maximum(h, 0.0), 3, 3)
    for i in range(2, 6):
        h = jnp.maximum(_conv1d(h, params["msg_conv"][i]), 0.0)
    h = _maxpool1d(h, 3, 3).reshape(2 * M, -1)                      # (2M, 5*hd)
    msg_goal = mlp(h,
                   ((params["msg_fc_w1"], params["msg_fc_b1"]),
                    (params["msg_fc_w2"], params["msg_fc_b2"])),
                   (True, False))
    char_rep, goal_rep = msg_goal[:M], msg_goal[M:]

    st_in = jnp.concatenate(
        [blstats_emb, crop_rep, glyphs_rep, char_rep, goal_rep], axis=1)

    # --- trunk fc1 -> fc2 and policy/baseline heads in ONE fused kernel; the
    #     fc2 hidden (policy_hiddens) is the auxiliary output, so the (M,H)
    #     hidden never round-trips HBM between trunk and heads.  fc1's d_in is
    #     K-tiled inside fused_mlp_pallas when it is large. ---
    heads, st = mlp(st_in,
                    ((params["fc1_w"], params["fc1_b"]),
                     (params["fc2_w"], params["fc2_b"]),
                     (params["head_w"], params["head_b"])),
                    (True, True, False),
                    aux_output=1)
    # sphere_norm == 0 in this configuration -> no L2 normalization.
    policy_logits = heads[:, : cfg.num_actions]
    baseline = heads[:, cfg.num_actions]

    # Eval-mode action (argmax).
    # TODO(synk): training-mode multinomial sampling and the use_lstm=True LSTM
    # core are not implemented.
    action = jnp.argmax(policy_logits, axis=1)

    outputs = dict(
        policy_logits=policy_logits.reshape(T, B, cfg.num_actions),
        baseline=baseline.reshape(T, B),
        action=action.reshape(T, B),
        policy_hiddens=st,
    )
    return outputs, core_state


@functools.partial(jax.jit, static_argnames=("cfg", "use_pallas", "tm"))
def run_forward(params, env_outputs, goal, core_state, cfg,
                use_pallas=True, tm=None):
    return nethack_policy_forward(params, env_outputs, goal, core_state, cfg,
                                  use_pallas=use_pallas, tm=tm)


# ----------------------------------------------------------------------------
# Demo / correctness check
# ----------------------------------------------------------------------------
if __name__ == "__main__":
    cfg = Config(H=11, W=15,            # small odd glyph map (real NetHack: 21x79)
                 blstats_size=26, num_actions=23,
                 hidden_dim=256,        # module default is 1024; small demo
                 embedding_dim=64, crop_dim=9, num_layers=5,
                 msg_hdim=64, msg_edim=32, msg_len=256,
                 num_glyphs=128,        # stand-in for nethack.MAX_GLYPH
                 num_chars=NUM_CHARS)
    T, B = 3, 2                         # T*B = 6 exercises the row-padding path

    key = jax.random.PRNGKey(0)
    k_par, k_gly, k_bls, k_xy, k_msg, k_goal = jax.random.split(key, 6)

    params = make_params(k_par, cfg)

    glyphs = jax.random.randint(k_gly, (T, B, cfg.H, cfg.W), 0,
                                cfg.num_glyphs, jnp.int32)
    blstats = jax.random.normal(k_bls, (T, B, cfg.blstats_size), jnp.float32)
    kx, ky = jax.random.split(k_xy)
    xs = jax.random.randint(kx, (T, B), 0, cfg.W).astype(jnp.float32)
    ys = jax.random.randint(ky, (T, B), 0, cfg.H).astype(jnp.float32)
    blstats = blstats.at[..., 0].set(xs).at[..., 1].set(ys)
    message = jax.random.randint(k_msg, (T, B, cfg.msg_len), 0,
                                 cfg.num_chars, jnp.int32)
    goal = jax.random.randint(k_goal, (T, B, cfg.msg_len), 0,
                              cfg.num_chars, jnp.int32)

    env = dict(glyphs=glyphs, blstats=blstats, message=message)
    core_state = tuple()

    # Warm the Buffered(1) probe before jit tracing.
    _single_buffer_supported()

    # ---- float32: Pallas kernels vs pure-JAX reference ----
    # (the trunk call has d_in = 2160 > 2048, so the K-tiled path is exercised)
    out_pl, cs_pl = run_forward(params, env, goal, core_state, cfg=cfg,
                                use_pallas=True)
    out_pl = jax.block_until_ready(out_pl)

    out_rf, _ = run_forward(params, env, goal, core_state, cfg=cfg,
                            use_pallas=False)
    out_rf = jax.block_until_ready(out_rf)

    assert out_pl["policy_logits"].shape == (T, B, cfg.num_actions)
    assert out_pl["baseline"].shape == (T, B)
    assert out_pl["action"].shape == (T, B)
    assert out_pl["policy_hiddens"].shape == (T * B, cfg.hidden_dim)
    assert cs_pl == tuple()

    for name in ("policy_logits", "baseline", "policy_hiddens"):
        a, b = out_pl[name], out_rf[name]
        assert jnp.allclose(a, b, atol=5e-3, rtol=5e-3), (
            name, float(jnp.max(jnp.abs(a - b))))

    # ---- bfloat16 MLP weights + bf16 streamed activations (f32 MXU acc) ----
    params_bf16 = cast_mlp_weights(params, jnp.bfloat16)
    out_pl16, _ = run_forward(params_bf16, env, goal, core_state, cfg=cfg,
                              use_pallas=True)
    out_pl16 = jax.block_until_ready(out_pl16)
    out_rf16, _ = run_forward(params_bf16, env, goal, core_state, cfg=cfg,
                              use_pallas=False)
    out_rf16 = jax.block_until_ready(out_rf16)
    for name in ("policy_logits", "baseline", "policy_hiddens"):
        a, b = out_pl16[name], out_rf16[name]
        assert jnp.allclose(a, b, atol=3e-2, rtol=3e-2), (
            name, float(jnp.max(jnp.abs(a - b))))

    print("KERNEL_OK")
</pallas_src>

<mosaic_0001>
module attributes {stable_mosaic.version = 11 : i64} {
  func.func @probe(%arg0: i32, %arg1: memref<8x128xf32, #tpu.memory_space<vmem>>, %arg2: memref<8x128xf32, #tpu.memory_space<vmem>>) attributes {dimension_semantics = [#tpu.dimension_semantics<arbitrary>], iteration_bounds = array<i64: 2>, scalar_prefetch = 0 : i64, scratch_operands = 0 : i64, tpu.core_type = #tpu.core_type<tc>, window_params = [{pipeline_mode = #tpu.pipeline_mode<synchronous>, transform_indices = @transform_0, window_bounds = array<i64: 8, 128>}, {transform_indices = @transform_1, window_bounds = array<i64: 8, 128>}]} {
    %c0 = arith.constant 0 : index
    %c0_0 = arith.constant 0 : index
    %0 = vector.load %arg1[%c0, %c0_0] : memref<8x128xf32, #tpu.memory_space<vmem>>, vector<8x128xf32>
    %cst = arith.constant 1.000000e+00 : f32
    %1 = vector.broadcast %cst : f32 to vector<8x128xf32>
    %2 = arith.addf %0, %1 : vector<8x128xf32>
    %c0_1 = arith.constant 0 : index
    %c0_2 = arith.constant 0 : index
    %3 = vector.load %arg2[%c0_1, %c0_2] : memref<8x128xf32, #tpu.memory_space<vmem>>, vector<8x128xf32>
    tpu.vector_store %arg2[%c0_1, %c0_2], %2 {strides = array<i32>} : memref<8x128xf32, #tpu.memory_space<vmem>>, vector<8x128xf32>,
    return
  }
  func.func @transform_0(%arg0: i32) -> (i32, i32) {
    %c0_i32 = arith.constant 0 : i32
    %c0_i32_0 = arith.constant 0 : i32
    %c0_i32_1 = arith.constant 0 : i32
    return %c0_i32, %c0_i32_0 : i32, i32
  }
  func.func @transform_1(%arg0: i32) -> (i32, i32) {
    %c0_i32 = arith.constant 0 : i32
    %c0_i32_0 = arith.constant 0 : i32
    return %arg0, %c0_i32 : i32, i32
  }
}

module attributes {stable_mosaic.version = 11 : i64} {
  func.func @kernel(%arg0: i32, %arg1: i32, %arg2: memref<8x320xf32, #tpu.memory_space<vmem>>, %arg3: memref<320x128xf32, #tpu.memory_space<vmem>>, %arg4: memref<1x128xf32, #tpu.memory_space<vmem>>, %arg5: memref<128x64xf32, #tpu.memory_space<vmem>>, %arg6: memref<1x64xf32, #tpu.memory_space<vmem>>, %arg7: memref<8x64xf32, #tpu.memory_space<vmem>>, %arg8: memref<8x128xf32, #tpu.memory_space<vmem>>) attributes {dimension_semantics = [#tpu.dimension_semantics<parallel>, #tpu.dimension_semantics<arbitrary>], iteration_bounds = array<i64: 2, 1>, scalar_prefetch = 0 : i64, scratch_operands = 1 : i64, tpu.core_type = #tpu.core_type<tc>, window_params = [{transform_indices = @transform_0, window_bounds = array<i64: 8, 320>}, {pipeline_mode = #tpu.pipeline_mode<synchronous>, transform_indices = @transform_1, window_bounds = array<i64: 320, 128>}, {pipeline_mode = #tpu.pipeline_mode<synchronous>, transform_indices = @transform_2, window_bounds = array<i64: 1, 128>}, {pipeline_mode = #tpu.pipeline_mode<synchronous>, transform_indices = @transform_3, window_bounds = array<i64: 128, 64>}, {pipeline_mode = #tpu.pipeline_mode<synchronous>, transform_indices = @transform_4, window_bounds = array<i64: 1, 64>}, {transform_indices = @transform_5, window_bounds = array<i64: 8, 64>}]} {
    %c0_i32 = arith.constant 0 : i32
    %0 = arith.cmpi eq, %arg1, %c0_i32 : i32
    %1 = arith.extui %0 : i1 to i32
    %c0_i32_0 = arith.constant 0 : i32
    %2 = arith.cmpi ne, %1, %c0_i32_0 : i32
    scf.if %2 {
      %cst_10 = arith.constant 0.000000e+00 : f32
      %12 = vector.broadcast %cst_10 : f32 to vector<8x128xf32>
      %c0_11 = arith.constant 0 : index
      %c0_12 = arith.constant 0 : index
      %13 = vector.load %arg8[%c0_11, %c0_12] : memref<8x128xf32, #tpu.memory_space<vmem>>, vector<8x128xf32>
      tpu.vector_store %arg8[%c0_11, %c0_12], %12 {strides = array<i32>} : memref<8x128xf32, #tpu.memory_space<vmem>>, vector<8x128xf32>,
    } else {
    }
    %c0 = arith.constant 0 : index
    %c0_1 = arith.constant 0 : index
    %3 = vector.load %arg3[%c0, %c0_1] : memref<320x128xf32, #tpu.memory_space<vmem>>, vector<320x128xf32>
    %c0_2 = arith.constant 0 : index
    %c0_3 = arith.constant 0 : index
    %4 = vector.load %arg8[%c0_2, %c0_3] : memref<8x128xf32, #tpu.memory_space<vmem>>, vector<8x128xf32>
    %c0_4 = arith.constant 0 : index
    %c0_5 = arith.constant 0 : index
    %5 = vector.load %arg2[%c0_4, %c0_5] : memref<8x320xf32, #tpu.memory_space<vmem>>, vector<8x320xf32>
    %cst = arith.constant dense<0.000000e+00> : vector<8x128xf32>
    %6 = tpu.matmul %5, %3, %cst {dimension_numbers = #tpu.dot_dimension_numbers<[1], [0], [0], [1], [0, 0, 1, 1], [], []>} : vector<8x320xf32>, vector<320x128xf32>, vector<8x128xf32> -> vector<8x128xf32>
    %7 = arith.addf %4, %6 : vector<8x128xf32>
    %c0_6 = arith.constant 0 : index
    %c0_7 = arith.constant 0 : index
    %8 = vector.load %arg8[%c0_6, %c0_7] : memref<8x128xf32, #tpu.memory_space<vmem>>, vector<8x128xf32>
    tpu.vector_store %arg8[%c0_6, %c0_7], %7 {strides = array<i32>} : memref<8x128xf32, #tpu.memory_space<vmem>>, vector<8x128xf32>,
    %c0_i32_8 = arith.constant 0 : i32
    %9 = arith.cmpi eq, %arg1, %c0_i32_8 : i32
    %10 = arith.extui %9 : i1 to i32
    %c0_i32_9 = arith.constant 0 : i32
    %11 = arith.cmpi ne, %10, %c0_i32_9 : i32
    scf.if %11 {
      %c0_10 = arith.constant 0 : index
      %c0_11 = arith.constant 0 : index
      %12 = vector.load %arg8[%c0_10, %c0_11] : memref<8x128xf32, #tpu.memory_space<vmem>>, vector<8x128xf32>
      %c0_12 = arith.constant 0 : index
      %c0_13 = arith.constant 0 : index
      %13 = vector.load %arg4[%c0_12, %c0_13] : memref<1x128xf32, #tpu.memory_space<vmem>>, vector<1x128xf32>
      %14 = vector.broadcast %13 : vector<1x128xf32> to vector<8x128xf32>
      %15 = arith.addf %12, %14 : vector<8x128xf32>
      %cst_14 = arith.constant 0.000000e+00 : f32
      %16 = vector.broadcast %cst_14 : f32 to vector<8x128xf32>
      %17 = arith.maximumf %15, %16 : vector<8x128xf32>
      %c0_15 = arith.constant 0 : index
      %c0_16 = arith.constant 0 : index
      %18 = vector.load %arg5[%c0_15, %c0_16] : memref<128x64xf32, #tpu.memory_space<vmem>>, vector<128x64xf32>
      %cst_17 = arith.constant dense<0.000000e+00> : vector<8x64xf32>
      %19 = tpu.matmul %17, %18, %cst_17 {dimension_numbers = #tpu.dot_dimension_numbers<[1], [0], [0], [1], [0, 0, 1, 1], [], []>} : vector<8x128xf32>, vector<128x64xf32>, vector<8x64xf32> -> vector<8x64xf32>
      %c0_18 = arith.constant 0 : index
      %c0_19 = arith.constant 0 : index
      %20 = vector.load %arg6[%c0_18, %c0_19] : memref<1x64xf32, #tpu.memory_space<vmem>>, vector<1x64xf32>
      %21 = vector.broadcast %20 : vector<1x64xf32> to vector<8x64xf32>
      %22 = arith.addf %19, %21 : vector<8x64xf32>
      %c0_20 = arith.constant 0 : index
      %c0_21 = arith.constant 0 : index
      %23 = vector.load %arg7[%c0_20, %c0_21] : memref<8x64xf32, #tpu.memory_space<vmem>>, vector<8x64xf32>
      tpu.vector_store %arg7[%c0_20, %c0_21], %22 {strides = array<i32>} : memref<8x64xf32, #tpu.memory_space<vmem>>, vector<8x64xf32>,
    } else {
    }
    return
  }
  func.func @transform_0(%arg0: i32, %arg1: i32) -> (i32, i32) {
    %c0_i32 = arith.constant 0 : i32
    return %arg0, %arg1 : i32, i32
  }
  func.func @transform_1(%arg0: i32, %arg1: i32) -> (i32, i32) {
    %c0_i32 = arith.constant 0 : i32
    %c0_i32_0 = arith.constant 0 : i32
    %c0_i32_1 = arith.constant 0 : i32
    return %c0_i32, %c0_i32_0 : i32, i32
  }
  func.func @transform_2(%arg0: i32, %arg1: i32) -> (i32, i32) {
    %c0_i32 = arith.constant 0 : i32
    %c0_i32_0 = arith.constant 0 : i32
    %c0_i32_1 = arith.constant 0 : i32
    return %c0_i32, %c0_i32_0 : i32, i32
  }
  func.func @transform_3(%arg0: i32, %arg1: i32) -> (i32, i32) {
    %c0_i32 = arith.constant 0 : i32
    %c0_i32_0 = arith.constant 0 : i32
    %c0_i32_1 = arith.constant 0 : i32
    return %c0_i32, %c0_i32_0 : i32, i32
  }
  func.func @transform_4(%arg0: i32, %arg1: i32) -> (i32, i32) {
    %c0_i32 = arith.constant 0 : i32
    %c0_i32_0 = arith.constant 0 : i32
    %c0_i32_1 = arith.constant 0 : i32
    return %c0_i32, %c0_i32_0 : i32, i32
  }
  func.func @transform_5(%arg0: i32, %arg1: i32) -> (i32, i32) {
    %c0_i32 = arith.constant 0 : i32
    %c0_i32_0 = arith.constant 0 : i32
    return %arg0, %c0_i32 : i32, i32
  }
}

module attributes {stable_mosaic.version = 11 : i64} {
  func.func @kernel(%arg0: i32, %arg1: i32, %arg2: memref<8x26xf32, #tpu.memory_space<vmem>>, %arg3: memref<26x64xf32, #tpu.memory_space<vmem>>, %arg4: memref<1x64xf32, #tpu.memory_space<vmem>>, %arg5: memref<64x64xf32, #tpu.memory_space<vmem>>, %arg6: memref<1x64xf32, #tpu.memory_space<vmem>>, %arg7: memref<8x64xf32, #tpu.memory_space<vmem>>, %arg8: memref<8x64xf32, #tpu.memory_space<vmem>>) attributes {dimension_semantics = [#tpu.dimension_semantics<parallel>, #tpu.dimension_semantics<arbitrary>], iteration_bounds = array<i64: 1, 1>, scalar_prefetch = 0 : i64, scratch_operands = 1 : i64, tpu.core_type = #tpu.core_type<tc>, window_params = [{transform_indices = @transform_0, window_bounds = array<i64: 8, 26>}, {pipeline_mode = #tpu.pipeline_mode<synchronous>, transform_indices = @transform_1, window_bounds = array<i64: 26, 64>}, {pipeline_mode = #tpu.pipeline_mode<synchronous>, transform_indices = @transform_2, window_bounds = array<i64: 1, 64>}, {pipeline_mode = #tpu.pipeline_mode<synchronous>, transform_indices = @transform_3, window_bounds = array<i64: 64, 64>}, {pipeline_mode = #tpu.pipeline_mode<synchronous>, transform_indices = @transform_4, window_bounds = array<i64: 1, 64>}, {transform_indices = @transform_5, window_bounds = array<i64: 8, 64>}]} {
    %c0_i32 = arith.constant 0 : i32
    %0 = arith.cmpi eq, %arg1, %c0_i32 : i32
    %1 = arith.extui %0 : i1 to i32
    %c0_i32_0 = arith.constant 0 : i32
    %2 = arith.cmpi ne, %1, %c0_i32_0 : i32
    scf.if %2 {
      %cst_10 = arith.constant 0.000000e+00 : f32
      %12 = vector.broadcast %cst_10 : f32 to vector<8x64xf32>
      %c0_11 = arith.constant 0 : index
      %c0_12 = arith.constant 0 : index
      %13 = vector.load %arg8[%c0_11, %c0_12] : memref<8x64xf32, #tpu.memory_space<vmem>>, vector<8x64xf32>
      tpu.vector_store %arg8[%c0_11, %c0_12], %12 {strides = array<i32>} : memref<8x64xf32, #tpu.memory_space<vmem>>, vector<8x64xf32>,
    } else {
    }
    %c0 = arith.constant 0 : index
    %c0_1 = arith.constant 0 : index
    %3 = vector.load %arg3[%c0, %c0_1] : memref<26x64xf32, #tpu.memory_space<vmem>>, vector<26x64xf32>
    %c0_2 = arith.constant 0 : index
    %c0_3 = arith.constant 0 : index
    %4 = vector.load %arg8[%c0_2, %c0_3] : memref<8x64xf32, #tpu.memory_space<vmem>>, vector<8x64xf32>
    %c0_4 = arith.constant 0 : index
    %c0_5 = arith.constant 0 : index
    %5 = vector.load %arg2[%c0_4, %c0_5] : memref<8x26xf32, #tpu.memory_space<vmem>>, vector<8x26xf32>
    %cst = arith.constant dense<0.000000e+00> : vector<8x64xf32>
    %6 = tpu.matmul %5, %3, %cst {dimension_numbers = #tpu.dot_dimension_numbers<[1], [0], [0], [1], [0, 0, 1, 1], [], []>} : vector<8x26xf32>, vector<26x64xf32>, vector<8x64xf32> -> vector<8x64xf32>
    %7 = arith.addf %4, %6 : vector<8x64xf32>
    %c0_6 = arith.constant 0 : index
    %c0_7 = arith.constant 0 : index
    %8 = vector.load %arg8[%c0_6, %c0_7] : memref<8x64xf32, #tpu.memory_space<vmem>>, vector<8x64xf32>
    tpu.vector_store %arg8[%c0_6, %c0_7], %7 {strides = array<i32>} : memref<8x64xf32, #tpu.memory_space<vmem>>, vector<8x64xf32>,
    %c0_i32_8 = arith.constant 0 : i32
    %9 = arith.cmpi eq, %arg1, %c0_i32_8 : i32
    %10 = arith.extui %9 : i1 to i32
    %c0_i32_9 = arith.constant 0 : i32
    %11 = arith.cmpi ne, %10, %c0_i32_9 : i32
    scf.if %11 {
      %c0_10 = arith.constant 0 : index
      %c0_11 = arith.constant 0 : index
      %12 = vector.load %arg8[%c0_10, %c0_11] : memref<8x64xf32, #tpu.memory_space<vmem>>, vector<8x64xf32>
      %c0_12 = arith.constant 0 : index
      %c0_13 = arith.constant 0 : index
      %13 = vector.load %arg4[%c0_12, %c0_13] : memref<1x64xf32, #tpu.memory_space<vmem>>, vector<1x64xf32>
      %14 = vector.broadcast %13 : vector<1x64xf32> to vector<8x64xf32>
      %15 = arith.addf %12, %14 : vector<8x64xf32>
      %cst_14 = arith.constant 0.000000e+00 : f32
      %16 = vector.broadcast %cst_14 : f32 to vector<8x64xf32>
      %17 = arith.maximumf %15, %16 : vector<8x64xf32>
      %c0_15 = arith.constant 0 : index
      %c0_16 = arith.constant 0 : index
      %18 = vector.load %arg5[%c0_15, %c0_16] : memref<64x64xf32, #tpu.memory_space<vmem>>, vector<64x64xf32>
      %cst_17 = arith.constant dense<0.000000e+00> : vector<8x64xf32>
      %19 = tpu.matmul %17, %18, %cst_17 {dimension_numbers = #tpu.dot_dimension_numbers<[1], [0], [0], [1], [0, 0, 1, 1], [], []>} : vector<8x64xf32>, vector<64x64xf32>, vector<8x64xf32> -> vector<8x64xf32>
      %c0_18 = arith.constant 0 : index
      %c0_19 = arith.constant 0 : index
      %20 = vector.load %arg6[%c0_18, %c0_19] : memref<1x64xf32, #tpu.memory_space<vmem>>, vector<1x64xf32>
      %21 = vector.broadcast %20 : vector<1x64xf32> to vector<8x64xf32>
      %22 = arith.addf %19, %21 : vector<8x64xf32>
      %cst_20 = arith.constant 0.000000e+00 : f32
      %23 = vector.broadcast %cst_20 : f32 to vector<8x64xf32>
      %24 = arith.maximumf %22, %23 : vector<8x64xf32>
      %c0_21 = arith.constant 0 : index
      %c0_22 = arith.constant 0 : index
      %25 = vector.load %arg7[%c0_21, %c0_22] : memref<8x64xf32, #tpu.memory_space<vmem>>, vector<8x64xf32>
      tpu.vector_store %arg7[%c0_21, %c0_22], %24 {strides = array<i32>} : memref<8x64xf32, #tpu.memory_space<vmem>>, vector<8x64xf32>,
    } else {
    }
    return
  }
  func.func @transform_0(%arg0: i32, %arg1: i32) -> (i32, i32) {
    %c0_i32 = arith.constant 0 : i32
    return %arg0, %arg1 : i32, i32
  }
  func.func @transform_1(%arg0: i32, %arg1: i32) -> (i32, i32) {
    %c0_i32 = arith.constant 0 : i32
    %c0_i32_0 = arith.constant 0 : i32
    %c0_i32_1 = arith.constant 0 : i32
    return %c0_i32, %c0_i32_0 : i32, i32
  }
  func.func @transform_2(%arg0: i32, %arg1: i32) -> (i32, i32) {
    %c0_i32 = arith.constant 0 : i32
    %c0_i32_0 = arith.constant 0 : i32
    %c0_i32_1 = arith.constant 0 : i32
    return %c0_i32, %c0_i32_0 : i32, i32
  }
  func.func @transform_3(%arg0: i32, %arg1: i32) -> (i32, i32) {
    %c0_i32 = arith.constant 0 : i32
    %c0_i32_0 = arith.constant 0 : i32
    %c0_i32_1 = arith.constant 0 : i32
    return %c0_i32, %c0_i32_0 : i32, i32
  }
  func.func @transform_4(%arg0: i32, %arg1: i32) -> (i32, i32) {
    %c0_i32 = arith.constant 0 : i32
    %c0_i32_0 = arith.constant 0 : i32
    %c0_i32_1 = arith.constant 0 : i32
    return %c0_i32, %c0_i32_0 : i32, i32
  }
  func.func @transform_5(%arg0: i32, %arg1: i32) -> (i32, i32) {
    %c0_i32 = arith.constant 0 : i32
    %c0_i32_0 = arith.constant 0 : i32
    return %arg0, %c0_i32 : i32, i32
  }
}

module attributes {stable_mosaic.version = 11 : i64} {
  func.func @kernel(%arg0: i32, %arg1: i32, %arg2: memref<8x512xf32, #tpu.memory_space<vmem>>, %arg3: memref<512x256xf32, #tpu.memory_space<vmem>>, %arg4: memref<1x256xf32, #tpu.memory_space<vmem>>, %arg5: memref<256x256xf32, #tpu.memory_space<vmem>>, %arg6: memref<1x256xf32, #tpu.memory_space<vmem>>, %arg7: memref<256x24xf32, #tpu.memory_space<vmem>>, %arg8: memref<1x24xf32, #tpu.memory_space<vmem>>, %arg9: memref<8x24xf32, #tpu.memory_space<vmem>>, %arg10: memref<8x256xf32, #tpu.memory_space<vmem>>, %arg11: memref<8x256xf32, #tpu.memory_space<vmem>>) attributes {dimension_semantics = [#tpu.dimension_semantics<parallel>, #tpu.dimension_semantics<arbitrary>], iteration_bounds = array<i64: 1, 5>, scalar_prefetch = 0 : i64, scratch_operands = 1 : i64, tpu.core_type = #tpu.core_type<tc>, window_params = [{transform_indices = @transform_0, window_bounds = array<i64: 8, 512>}, {transform_indices = @transform_1, window_bounds = array<i64: 512, 256>}, {pipeline_mode = #tpu.pipeline_mode<synchronous>, transform_indices = @transform_2, window_bounds = array<i64: 1, 256>}, {pipeline_mode = #tpu.pipeline_mode<synchronous>, transform_indices = @transform_3, window_bounds = array<i64: 256, 256>}, {pipeline_mode = #tpu.pipeline_mode<synchronous>, transform_indices = @transform_4, window_bounds = array<i64: 1, 256>}, {pipeline_mode = #tpu.pipeline_mode<synchronous>, transform_indices = @transform_5, window_bounds = array<i64: 256, 24>}, {pipeline_mode = #tpu.pipeline_mode<synchronous>, transform_indices = @transform_6, window_bounds = array<i64: 1, 24>}, {transform_indices = @transform_7, window_bounds = array<i64: 8, 24>}, {transform_indices = @transform_8, window_bounds = array<i64: 8, 256>}]} {
    %c0_i32 = arith.constant 0 : i32
    %0 = arith.cmpi eq, %arg1, %c0_i32 : i32
    %1 = arith.extui %0 : i1 to i32
    %c0_i32_0 = arith.constant 0 : i32
    %2 = arith.cmpi ne, %1, %c0_i32_0 : i32
    scf.if %2 {
      %cst_9 = arith.constant 0.000000e+00 : f32
      %12 = vector.broadcast %cst_9 : f32 to vector<8x256xf32>
      %c0_10 = arith.constant 0 : index
      %c0_11 = arith.constant 0 : index
      %13 = vector.load %arg11[%c0_10, %c0_11] : memref<8x256xf32, #tpu.memory_space<vmem>>, vector<8x256xf32>
      tpu.vector_store %arg11[%c0_10, %c0_11], %12 {strides = array<i32>} : memref<8x256xf32, #tpu.memory_space<vmem>>, vector<8x256xf32>,
    } else {
    }
    %c0 = arith.constant 0 : index
    %c0_1 = arith.constant 0 : index
    %3 = vector.load %arg3[%c0, %c0_1] : memref<512x256xf32, #tpu.memory_space<vmem>>, vector<512x256xf32>
    %c0_2 = arith.constant 0 : index
    %c0_3 = arith.constant 0 : index
    %4 = vector.load %arg11[%c0_2, %c0_3] : memref<8x256xf32, #tpu.memory_space<vmem>>, vector<8x256xf32>
    %c0_4 = arith.constant 0 : index
    %c0_5 = arith.constant 0 : index
    %5 = vector.load %arg2[%c0_4, %c0_5] : memref<8x512xf32, #tpu.memory_space<vmem>>, vector<8x512xf32>
    %cst = arith.constant dense<0.000000e+00> : vector<8x256xf32>
    %6 = tpu.matmul %5, %3, %cst {dimension_numbers = #tpu.dot_dimension_numbers<[1], [0], [0], [1], [0, 0, 1, 1], [], []>} : vector<8x512xf32>, vector<512x256xf32>, vector<8x256xf32> -> vector<8x256xf32>
    %7 = arith.addf %4, %6 : vector<8x256xf32>
    %c0_6 = arith.constant 0 : index
    %c0_7 = arith.constant 0 : index
    %8 = vector.load %arg11[%c0_6, %c0_7] : memref<8x256xf32, #tpu.memory_space<vmem>>, vector<8x256xf32>
    tpu.vector_store %arg11[%c0_6, %c0_7], %7 {strides = array<i32>} : memref<8x256xf32, #tpu.memory_space<vmem>>, vector<8x256xf32>,
    %c4_i32 = arith.constant 4 : i32
    %9 = arith.cmpi eq, %arg1, %c4_i32 : i32
    %10 = arith.extui %9 : i1 to i32
    %c0_i32_8 = arith.constant 0 : i32
    %11 = arith.cmpi ne, %10, %c0_i32_8 : i32
    scf.if %11 {
      %c0_9 = arith.constant 0 : index
      %c0_10 = arith.constant 0 : index
      %12 = vector.load %arg11[%c0_9, %c0_10] : memref<8x256xf32, #tpu.memory_space<vmem>>, vector<8x256xf32>
      %c0_11 = arith.constant 0 : index
      %c0_12 = arith.constant 0 : index
      %13 = vector.load %arg4[%c0_11, %c0_12] : memref<1x256xf32, #tpu.memory_space<vmem>>, vector<1x256xf32>
      %14 = vector.broadcast %13 : vector<1x256xf32> to vector<8x256xf32>
      %15 = arith.addf %12, %14 : vector<8x256xf32>
      %cst_13 = arith.constant 0.000000e+00 : f32
      %16 = vector.broadcast %cst_13 : f32 to vector<8x256xf32>
      %17 = arith.maximumf %15, %16 : vector<8x256xf32>
      %c0_14 = arith.constant 0 : index
      %c0_15 = arith.constant 0 : index
      %18 = vector.load %arg5[%c0_14, %c0_15] : memref<256x256xf32, #tpu.memory_space<vmem>>, vector<256x256xf32>
      %cst_16 = arith.constant dense<0.000000e+00> : vector<8x256xf32>
      %19 = tpu.matmul %17, %18, %cst_16 {dimension_numbers = #tpu.dot_dimension_numbers<[1], [0], [0], [1], [0, 0, 1, 1], [], []>} : vector<8x256xf32>, vector<256x256xf32>, vector<8x256xf32> -> vector<8x256xf32>
      %c0_17 = arith.constant 0 : index
      %c0_18 = arith.constant 0 : index
      %20 = vector.load %arg6[%c0_17, %c0_18] : memref<1x256xf32, #tpu.memory_space<vmem>>, vector<1x256xf32>
      %21 = vector.broadcast %20 : vector<1x256xf32> to vector<8x256xf32>
      %22 = arith.addf %19, %21 : vector<8x256xf32>
      %cst_19 = arith.constant 0.000000e+00 : f32
      %23 = vector.broadcast %cst_19 : f32 to vector<8x256xf32>
      %24 = arith.maximumf %22, %23 : vector<8x256xf32>
      %c0_20 = arith.constant 0 : index
      %c0_21 = arith.constant 0 : index
      %25 = vector.load %arg10[%c0_20, %c0_21] : memref<8x256xf32, #tpu.memory_space<vmem>>, vector<8x256xf32>
      tpu.vector_store %arg10[%c0_20, %c0_21], %24 {strides = array<i32>} : memref<8x256xf32, #tpu.memory_space<vmem>>, vector<8x256xf32>,
      %c0_22 = arith.constant 0 : index
      %c0_23 = arith.constant 0 : index
      %26 = vector.load %arg7[%c0_22, %c0_23] : memref<256x24xf32, #tpu.memory_space<vmem>>, vector<256x24xf32>
      %cst_24 = arith.constant dense<0.000000e+00> : vector<8x24xf32>
      %27 = tpu.matmul %24, %26, %cst_24 {dimension_numbers = #tpu.dot_dimension_numbers<[1], [0], [0], [1], [0, 0, 1, 1], [], []>} : vector<8x256xf32>, vector<256x24xf32>, vector<8x24xf32> -> vector<8x24xf32>
      %c0_25 = arith.constant 0 : index
      %c0_26 = arith.constant 0 : index
      %28 = vector.load %arg8[%c0_25, %c0_26] : memref<1x24xf32, #tpu.memory_space<vmem>>, vector<1x24xf32>
      %29 = vector.broadcast %28 : vector<1x24xf32> to vector<8x24xf32>
      %30 = arith.addf %27, %29 : vector<8x24xf32>
      %c0_27 = arith.constant 0 : index
      %c0_28 = arith.constant 0 : index
      %31 = vector.load %arg9[%c0_27, %c0_28] : memref<8x24xf32, #tpu.memory_space<vmem>>, vector<8x24xf32>
      tpu.vector_store %arg9[%c0_27, %c0_28], %30 {strides = array<i32>} : memref<8x24xf32, #tpu.memory_space<vmem>>, vector<8x24xf32>,
    } else {
    }
    return
  }
  func.func @transform_0(%arg0: i32, %arg1: i32) -> (i32, i32) {
    %c0_i32 = arith.constant 0 : i32
    return %arg0, %arg1 : i32, i32
  }
  func.func @transform_1(%arg0: i32, %arg1: i32) -> (i32, i32) {
    %c0_i32 = arith.constant 0 : i32
    %c0_i32_0 = arith.constant 0 : i32
    return %arg1, %c0_i32 : i32, i32
  }
  func.func @transform_2(%arg0: i32, %arg1: i32) -> (i32, i32) {
    %c0_i32 = arith.constant 0 : i32
    %c0_i32_0 = arith.constant 0 : i32
    %c0_i32_1 = arith.constant 0 : i32
    return %c0_i32, %c0_i32_0 : i32, i32
  }
  func.func @transform_3(%arg0: i32, %arg1: i32) -> (i32, i32) {
    %c0_i32 = arith.constant 0 : i32
    %c0_i32_0 = arith.constant 0 : i32
    %c0_i32_1 = arith.constant 0 : i32
    return %c0_i32, %c0_i32_0 : i32, i32
  }
  func.func @transform_4(%arg0: i32, %arg1: i32) -> (i32, i32) {
    %c0_i32 = arith.constant 0 : i32
    %c0_i32_0 = arith.constant 0 : i32
    %c0_i32_1 = arith.constant 0 : i32
    return %c0_i32, %c0_i32_0 : i32, i32
  }
  func.func @transform_5(%arg0: i32, %arg1: i32) -> (i32, i32) {
    %c0_i32 = arith.constant 0 : i32
    %c0_i32_0 = arith.constant 0 : i32
    %c0_i32_1 = arith.constant 0 : i32
    return %c0_i32, %c0_i32_0 : i32, i32
  }
  func.func @transform_6(%arg0: i32, %arg1: i32) -> (i32, i32) {
    %c0_i32 = arith.constant 0 : i32
    %c0_i32_0 = arith.constant 0 : i32
    %c0_i32_1 = arith.constant 0 : i32
    return %c0_i32, %c0_i32_0 : i32, i32
  }
  func.func @transform_7(%arg0: i32, %arg1: i32) -> (i32, i32) {
    %c0_i32 = arith.constant 0 : i32
    %c0_i32_0 = arith.constant 0 : i32
    return %arg0, %c0_i32 : i32, i32
  }
  func.func @transform_8(%arg0: i32, %arg1: i32) -> (i32, i32) {
    %c0_i32 = arith.constant 0 : i32
    %c0_i32_0 = arith.constant 0 : i32
    return %arg0, %c0_i32 : i32, i32
  }
}

</mosaic_0001>

<bundles_post_ra>
// kernel: tpu_custom_call.1
= control target key start
LH: loop header
LB: loop body
LE: loop exit
PB: predicated region body
PF: predicated region fallthrough
CT: control target
= control target key end

     0   :  { %6 = vsyncpa [#allocation3], 0  ;;  %s448_s0 = inlined_call_operand.hbm [shape: f32[8,128], index: 0, kind: input, shape index: {}]   ;;  %s449_s1 = inlined_call_operand.hbm [shape: f32[16,128], index: 1, kind: output, shape index: {}]  }
   0x1   :  { %7 = vsyncpa [#allocation4], 0 }
   0x2   :  { %9 = vsyncpa [#allocation4 + $0x1], 0  ;;  %s348_s6 = smov 0   ;;  %s350_s7 = smov 0  }
   0x3   :  { %s352_s8 = smov 0   ;;  %s354_s9 = smov 0  }
   0x4 LB: > { %s369_s10 = sadd.s32 4294967295, %s334_s9   ;;  %s184_s11 = sadd.s32 4294967294, %s334_s9   ;;  %s334_s9 = sphi %s354_s9, %s457_s9   ;;  %s330_s8 = sphi %s352_s8, %s456_s8   ;;  %s326_s7 = sphi %s350_s7, %s455_s7   ;;  %s322_s6 = sphi %s348_s6, %s454_s6  }
   0x5   : > { %s373_s12 = sadd.s32 1, %s334_s9   ;;  %s43_s13 = sadd.s32 1, %s330_s8 }
   0x6   : > { %s40_s14 = ssub.s32 %s334_s9, %s373_s12  ;;  %p53_p0 = scmp.ne.s32.totalorder %s330_s8, %s326_s7 }
   0x7   : > { %p41_p1 = scmp.eq.s32.totalorder %s40_s14, 0  ;;  %p54_p2 = scmp.eq.s32.totalorder %s369_s10, 1 }
   0x8   : > { %p59_p3 = scmp.ne.s32.totalorder %s326_s7, %s322_s6  ;;  %p60_p4 = scmp.eq.s32.totalorder %s184_s11, 1 }
   0x9   : > { %s384_s15 = scalar_select %p41_p1, %s330_s8, %s43_s13  }
   0xa   : > { %p386_p5 = por %p54_p2, %p53_p0  ;;  %p390_p6 = por %p60_p4, %p59_p3 }
   0xb   : > { %p185_p7 = scmp.ge.s32.totalorder %s334_s9, 1  ;;  %p67_p8 = scmp.lt.s32.totalorder %s334_s9, 3 }
   0xc   : > { %s451_s17 = scalar_select %p390_p6, 1, 0 }
   0xd   : > { %p208_p9 = scmp.eq.s32.totalorder %s369_s10, 0  ;;  %p397_p10 = pnand %p185_p7, %p67_p8 }
   0xe   : > { %s336_s19 = smov [#allocation2]  }
   0xf   : > { %s80_s20 = sshll.u32 %s336_s19, 4  ;;  %p200_p11 = pneg %p397_p10  ;;  %s81_s20 = int_to_ptr.vmem [resolvable:$true] %s80_s20 }
  0x10   : > { %s255_s21 = scalar_lea.vmem %s81_s20, 128  ;;  %p263_p3 = scmp.lt.s32.totalorder %s81_s20, %s81_s20 }
  0x11   : > { %p201_p12 = pnand %p208_p9, %p200_p11  ;;  %p256_p0 = scmp.ne.s32.totalorder %s81_s20, %s255_s21 }
  0x12   : > { %p264_p4 = scmp.lt.s32.totalorder %s255_s21, %s255_s21 }
  0x13   : > { %p246_p13 = pneg %p201_p12 }
  0x14   : > { %p265_p6 = por %p264_p4, %p263_p3 }
  0x15   : > { %p258_p1 = pnand %p256_p0, %p246_p13 }
  0x17   : > { %p259_p2 = pneg %p258_p1 }
  0x19   : > { %p266_p7 = pnand %p265_p6, %p259_p2 }
  0x1b   : > { %269 = shalt.err (!%p266_p7)
}
  0x1c   : > { %203 = dma.hbm_to_vmem [thread:$0]  (!%p201_p12), %s448_s0, 128, %s81_s20, [#allocation3]  }
  0x1d   : > { %93 = sbr.rel (%p397_p10) target bundleno = 60 (0x3c), region = 24 }
  0x22   : > { %313 = dma.done.wait (%p208_p9), [#allocation3], 128  }
  0x23   : > { %315 = vsyncadd (%p208_p9), [#allocation3], 4294967168  ;;  %s105_s24 = sand.u32 1, %s326_s7   ;;  %s191_s28 = sshll.u32 %s369_s10, 7  ;;  %v108_v0 = vld [vmem:[#allocation2] sm:$0xff] }
  0x24   : > { %s189_s25 = sshll.u32 %s105_s24, 3  ;;  %v109_v1 = vadd.f32 1.0, %v108_v0  ;;  %s123_s2 = scalar_lea.hbm %s449_s1, %s191_s28 }
  0x25   : > { %s107_s26 = scalar_lea.vmem [#allocation5], %s189_s25  ;;  %s112_s3 = scalar_lea.sflag [#allocation4], %s105_s24 }
  0x26   : > { %s125_s27 = sshll.u32 %s107_s26, 4  ;;  %110 = vst [vmem:[%s107_s26] sm:$0xff] %v109_v1  ;;  %s337_s5 = smov [#allocation5]   ;;  %s126_s27 = int_to_ptr.vmem [resolvable:$true] %s125_s27 }
  0x27   : > { %s270_s4 = scalar_lea.vmem %s126_s27, 128  ;;  %s274_s11 = sshll.u32 %s337_s5, 4  ;;  %s275_s11 = int_to_ptr.vmem [resolvable:$false] %s274_s11 }
  0x28   : > { %p271_p6 = scmp.ne.s32.totalorder %s126_s27, %s270_s4  ;;  %s276_s13 = scalar_lea.vmem %s275_s11, 256 }
  0x29   : > { %p277_p10 = scmp.lt.s32.totalorder %s126_s27, %s275_s11  ;;  %p278_p11 = scmp.lt.s32.totalorder %s276_s13, %s270_s4 }
  0x2a   : > { %p272_p8 = pnand %p271_p6, %p386_p5 }
  0x2b   : > { %p279_p12 = por %p278_p11, %p277_p10 }
  0x2c   : > { %p273_p9 = pneg %p272_p8 }
  0x2e   : > { %p280_p13 = pnand %p279_p12, %p273_p9 }
  0x30   : > { %283 = shalt.err (!%p280_p13)
}
  0x31   : > { %s284_s10 = scalar_lea.hbm %s123_s2, 128  ;;  %s288_s19 = scalar_lea.hbm %s449_s1, 256 }
  0x32   : > { %p285_p0 = scmp.ne.s32.totalorder %s123_s2, %s284_s10  ;;  %p289_p3 = scmp.lt.s32.totalorder %s123_s2, %s449_s1 }
  0x33   : > { %p290_p4 = scmp.lt.s32.totalorder %s288_s19, %s284_s10 }
  0x34   : > { %p286_p1 = pnand %p285_p0, %p386_p5 }
  0x35   : > { %p291_p7 = por %p290_p4, %p289_p3 }
  0x36   : > { %p287_p2 = pneg %p286_p1 }
  0x38   : > { %p292_p6 = pnand %p291_p7, %p287_p2 }
  0x3a   : > { %295 = shalt.err (!%p292_p6)
}
  0x3b   : > { %198 = dma.vmem_to_hbm [thread:$0]  (%p386_p5), %s126_s27, 128, %s123_s2, %s112_s3  }
  0x3c PF: > { %p210_p8 = scmp.ge.s32.totalorder %s334_s9, 2  ;;  %s137_s22 = sand.u32 1, %s322_s6  }
  0x3d   : > { %p453_p9 = scmp.ne.s32.totalorder %s451_s17, 0  ;;  %s138_s23 = scalar_lea.sflag [#allocation4], %s137_s22 }
  0x3f   : > { %p205_p10 = pnand %p210_p8, %p453_p9 }
  0x41   : > { %p206_p11 = pneg %p205_p10 }
  0x43   : > { %317 = dma.done.wait (%p206_p11), %s138_s23, 128  }
  0x44   : > { %319 = vsyncadd (%p206_p11), %s138_s23, 4294967168  ;;  %p12_p12 = scmp.ge.s32.totalorder %s373_s12, 4   ;;  %s454_s6 = smov %s326_s7 }
  0x45   : > { %s455_s7 = smov %s330_s8  ;;  %s456_s8 = smov %s384_s15 }
  0x46   : > { %s457_s9 = smov %s373_s12  ;;  %14 = sbr.rel (!%p12_p12) target bundleno = 4 (0x4), region = 61 }
  0x4b   :  { %143 = vsyncpa [#allocation3], 1 }
  0x4c   :  { %145 = vsyncpa [#allocation3 + $0x1], 1 }
  0x4d   :  { %146 = vsyncpa [#allocation4], 1 }
  0x4e   :  { %148 = vsyncpa [#allocation4 + $0x1], 1 }

// kernel: run_forward.4
= control target key start
LH: loop header
LB: loop body
LE: loop exit
PB: predicated region body
PF: predicated region fallthrough
CT: control target
= control target key end

     0   :  { %s830_s18 = smov 0   ;;  %s832_s19 = smov 0   ;;  %s1076_s0 = inlined_call_operand.vmem [shape: f32[16,320], index: 0, kind: input, shape index: {}]   ;;  %s1077_s1 = inlined_call_operand.vmem [shape: f32[320,128], index: 1, kind: input, shape index: {}]   ;;  %s1078_s2 = inlined_call_operand.vmem [shape: f32[1,128], index: 2, kind: input, shape index: {}]   ;;  %s1079_s3 = inlined_call_operand.vmem [shape: f32[128,64], index: 3, kind: input, shape index: {}]   ;;  %s1080_s4 = inlined_call_operand.vmem [shape: f32[1,64], index: 4, kind: input, shape index: {}]   ;;  %s1081_s5 = inlined_call_operand.vmem [shape: f32[16,64], index: 5, kind: output, shape index: {}]  }
   0x1   :  { %s834_s20 = smov 0  }
   0x2 LB: > { %s27_s21 = sadd.s32 1, %s792_s19  ;;  %p624_p0 = scmp.ge.s32.totalorder %s796_s20, 1  ;;  %s796_s20 = sphi %s834_s20, %s15_s20   ;;  %s792_s19 = sphi %s832_s19, %s1083_s19   ;;  %s788_s18 = sphi %s830_s18, %s1082_s18  }
   0x3   : > { %p29_p1 = scmp.ge.s32.totalorder %s27_s21, 2  ;;  %p206_p2 = scmp.lt.s32.totalorder %s796_s20, 3 }
   0x5   : > { %s1085_s21 = smov (%p29_p1, %s27_s21), 0  ;;  %p207_p3 = pnand %p624_p0, %p206_p2 }
   0x6   : > { %p238_p4 = scmp.lt.s32.totalorder (!%p207_p3), %s788_s18, 1 }
   0x7   : > { %210 = sbr.rel (%p207_p3) target bundleno = 444 (0x1bc), region = 40 }
   0xc   : > { %v287_v0 = vld [vmem:[%s1077_s1 + $0xf8] sm:$0xff]  ;;  %v286_v2 = vld [vmem:[%s1077_s1 + $0xf0] sm:$0xff]  ;;  %v798_v4 = vmov 0.0   ;;  %v285_v5 = vld [vmem:[%s1077_s1 + $0xe8] sm:$0xff]  ;;  %vm799_vm0 = vmmov 0   ;;  %s1087_s18 = smov (!%p238_p4, %s788_s18), 1 }
   0xd   : > { %v271_v1 = vld [vmem:[%s1077_s1 + $0x78] sm:$0xff]  ;;  %632 = vmatprep.subr.mxu0 %v287_v0  ;;  %v270_v3 = vld [vmem:[%s1077_s1 + $0x70] sm:$0xff]  ;;  %693 = vmatprep.subr.mxu1 %v798_v4  ;;  %v269_v6 = vld [vmem:[%s1077_s1 + $0x68] sm:$0xff]  ;;  %s747_s6 = smul.u32 24, %s1087_s18  ;;  %vm300_vm1 = vcmask 523264   ;;  %s626_s11 = sshll.u32 %s1087_s18, 3 }
   0xe   : > { %633 = vmatpush3.msra.mxu0 %v271_v1  ;;  %709 = vmatprep.mubr.msk.f32.mxu1 %vm799_vm0, %v798_v4  ;;  %v284_v7 = vld [vmem:[%s1077_s1 + $0xe0] sm:$0xff]  ;;  %v283_v9 = vld [vmem:[%s1077_s1 + $0xd8] sm:$0xff]  ;;  %v294_v12 = vld [vmem:[%s1077_s1 + $0x130] sm:$0xff]  ;;  %s250_s16 = scalar_lea.vmem %s1081_s5, %s626_s11 }
   0xf   : > { %634 = vmatprep.subr.mxu0 %v286_v2  ;;  %v268_v8 = vld [vmem:[%s1077_s1 + $0x60] sm:$0xff]  ;;  %v295_v10 = vld [vmem:[%s1077_s1 + $0x138] sm:$0xff]  ;;  %v282_v13 = vld [vmem:[%s1077_s1 + $0xd0] sm:$0xff]  ;;  %s923_s25 = scalar_lea.vmem %s1076_s0, %s747_s6 }
  0x10   : > { %635 = vmatpush3.msra.mxu0 %v270_v3  ;;  %v267_v11 = vld [vmem:[%s1077_s1 + $0x58] sm:$0xff]  ;;  %694 = vmatpush3.msra.mxu1 %v295_v10  ;;  %v293_v14 = vld [vmem:[%s1077_s1 + $0x128] sm:$0xff]  ;;  %v266_v15 = vld [vmem:[%s1077_s1 + $0x50] sm:$0xff] }
  0x11   : > { %636 = vmatprep.subr.mxu0 %v285_v5  ;;  %695 = vmatprep.subr.mxu1 %v798_v4  ;;  %v281_v16 = vld [vmem:[%s1077_s1 + $0xc8] sm:$0xff]  ;;  %v292_v17 = vld [vmem:[%s1077_s1 + $0x120] sm:$0xff]  ;;  %v291_v20 = vld [vmem:[%s1077_s1 + $0x118] sm:$0xff] }
  0x12   : > { %637 = vmatpush3.msra.mxu0 %v269_v6  ;;  %696 = vmatpush3.msra.mxu1 %v294_v12  ;;  %v265_v18 = vld [vmem:[%s1077_s1 + $0x48] sm:$0xff]  ;;  %v280_v19 = vld [vmem:[%s1077_s1 + $0xc0] sm:$0xff]  ;;  %v279_v22 = vld [vmem:[%s1077_s1 + $0xb8] sm:$0xff] }
  0x13   : > { %638 = vmatprep.subr.mxu0 %v284_v7  ;;  %697 = vmatprep.subr.mxu1 %v798_v4  ;;  %v264_v21 = vld [vmem:[%s1077_s1 + $0x40] sm:$0xff]  ;;  %v290_v23 = vld [vmem:[%s1077_s1 + $0x110] sm:$0xff]  ;;  %v263_v24 = vld [vmem:[%s1077_s1 + $0x38] sm:$0xff] }
  0x14   : > { %639 = vmatpush3.msra.mxu0 %v268_v8  ;;  %698 = vmatpush3.msra.mxu1 %v293_v14  ;;  %v278_v25 = vld [vmem:[%s1077_s1 + $0xb0] sm:$0xff]  ;;  %v298_v26 = vld [vmem:[%s923_s25 + $0x8] sm:$0xff]  ;;  %v288_v31 = vld [vmem:[%s1077_s1 + $0x100] sm:$0xff] }
  0x15   : > { %640 = vmatprep.subr.mxu0 %v283_v9  ;;  %699 = vmatprep.subr.mxu1 %v798_v4  ;;  %v262_v27 = vld [vmem:[%s1077_s1 + $0x30] sm:$0xff]  ;;  %v289_v28 = vld [vmem:[%s1077_s1 + $0x108] sm:$0xff]  ;;  %v276_v32 = vld [vmem:[%s1077_s1 + $0xa0] sm:$0xff] }
  0x16   : > { %641 = vmatpush3.msra.mxu0 %v267_v11  ;;  %700 = vmatpush3.msra.mxu1 %v292_v17  ;;  %v277_v29 = vld [vmem:[%s1077_s1 + $0xa8] sm:$0xff]  ;;  %v299_v33 = vld [vmem:[%s923_s25 + $0x10] sm:$0xff]  ;;  %v260_v34 = vld [vmem:[%s1077_s1 + $0x20] sm:$0xff] }
  0x17   : > { %642 = vmatprep.subr.mxu0 %v282_v13  ;;  %701 = vmatprep.subr.mxu1 %v798_v4  ;;  %v261_v30 = vld [vmem:[%s1077_s1 + $0x28] sm:$0xff]  ;;  %v275_v35 = vld [vmem:[%s1077_s1 + $0x98] sm:$0xff]  ;;  %v274_v38 = vld [vmem:[%s1077_s1 + $0x90] sm:$0xff] }
  0x18   : > { %643 = vmatpush3.msra.mxu0 %v266_v15  ;;  %702 = vmatpush3.msra.mxu1 %v291_v20  ;;  %v474_v36 = vld [vmem:[%s1079_s3 + $0x78] sm:$0xff]  ;;  %v473_v39 = vld [vmem:[%s1079_s3 + $0x70] sm:$0xff]  ;;  %v273_v41 = vld [vmem:[%s1077_s1 + $0x88] sm:$0xff] }
  0x19   : > { %644 = vmatprep.subr.mxu0 %v281_v16  ;;  %703 = vmatprep.subr.mxu1 %v798_v4  ;;  %v259_v37 = vld [vmem:[%s1077_s1 + $0x18] sm:$0xff]  ;;  %v258_v40 = vld [vmem:[%s1077_s1 + $0x10] sm:$0xff]  ;;  %v472_v42 = vld [vmem:[%s1079_s3 + $0x68] sm:$0xff] }
  0x1a   : > { %645 = vmatpush3.msra.mxu0 %v265_v18  ;;  %704 = vmatpush3.msra.mxu1 %v290_v23  ;;  %v257_v43 = vld [vmem:[%s1077_s1 + $0x8] sm:$0xff]  ;;  %v272_v44 = vld [vmem:[%s1077_s1 + $0x80] sm:$0xff]  ;;  %v470_v48 = vld [vmem:[%s1079_s3 + $0x58] sm:$0xff] }
  0x1b   : > { %646 = vmatprep.subr.mxu0 %v280_v19  ;;  %705 = vmatprep.subr.mxu1 %v798_v4  ;;  %v471_v45 = vld [vmem:[%s1079_s3 + $0x60] sm:$0xff]  ;;  %v469_v49 = vld [vmem:[%s1079_s3 + $0x50] sm:$0xff]  ;;  %v468_v50 = vld [vmem:[%s1079_s3 + $0x48] sm:$0xff] }
  0x1c   : > { %647 = vmatpush3.msra.mxu0 %v264_v21  ;;  %368 = vmatprep.mubr.f32.mxu0 %v298_v26  ;;  %v256_v46 = vld [vmem:[%s1077_s1] sm:$0xff]  ;;  %v466_v52 = vld [vmem:[%s1079_s3 + $0x38] sm:$0xff]  ;;  %v465_v53 = vld [vmem:[%s1079_s3 + $0x30] sm:$0xff] }
  0x1d   : > { %648 = vmatprep.subr.mxu0 %v279_v22  ;;  %706 = vmatpush3.msra.mxu1 %v289_v28  ;;  %v297_v47 = vld [vmem:[%s923_s25] sm:$0xff]  ;;  %v464_v54 = vld [vmem:[%s1079_s3 + $0x28] sm:$0xff]  ;;  %v462_v56 = vld [vmem:[%s1079_s3 + $0x18] sm:$0xff] }
  0x1e   : > { %649 = vmatpush3.msra.mxu0 %v263_v24  ;;  %707 = vmatprep.subr.mxu1 %v798_v4  ;;  %v467_v51 = vld [vmem:[%s1079_s3 + $0x40] sm:$0xff]  ;;  %v461_v57 = vld [vmem:[%s1079_s3 + $0x10] sm:$0xff]  ;;  %v460_v58 = vld [vmem:[%s1079_s3 + $0x8] sm:$0xff] }
  0x1f   : > { %650 = vmatprep.subr.mxu0 %v278_v25  ;;  %708 = vmatpush3.msra.mxu1 %v288_v31  ;;  %v463_v55 = vld [vmem:[%s1079_s3 + $0x20] sm:$0xff] }
  0x20   : > { %651 = vmatpush3.msra.mxu0 %v262_v27  ;;  %710 = vmatmul.mubr.msk.f32.vlgmr.msra.gmra.mxu1 %vm300_vm1, %v299_v33  ;;  %v459_v59 = vld [vmem:[%s1079_s3] sm:$0xff] }
  0x21   : > { %652 = vmatprep.subr.mxu0 %v277_v29  ;;  %712 = vmatprep.subr.mxu1 %v798_v4  ;;  %v628_v1 = vld [vmem:[%s1078_s2] ss:$0 sm:$0xff] }
  0x22   : > { %653 = vmatpush3.msra.mxu0 %v261_v30  ;;  %713 = vmatpush3.msra.mxu1 %v474_v36 }
  0x23   : > { %654 = vmatprep.subr.mxu0 %v276_v32  ;;  %714 = vmatprep.subr.mxu1 %v798_v4 }
  0x24   : > { %655 = vmatpush3.msra.mxu0 %v260_v34  ;;  %715 = vmatpush3.msra.mxu1 %v473_v39 }
  0x25   : > { %656 = vmatprep.subr.mxu0 %v275_v35  ;;  %716 = vmatprep.subr.mxu1 %v798_v4 }
  0x26   : > { %657 = vmatpush3.msra.mxu0 %v259_v37  ;;  %717 = vmatpush3.msra.mxu1 %v472_v42 }
  0x27   : > { %658 = vmatprep.subr.mxu0 %v274_v38  ;;  %718 = vmatprep.subr.mxu1 %v798_v4 }
  0x28   : > { %659 = vmatpush3.msra.mxu0 %v258_v40  ;;  %719 = vmatpush3.msra.mxu1 %v471_v45 }
  0x29   : > { %660 = vmatprep.subr.mxu0 %v273_v41  ;;  %720 = vmatprep.subr.mxu1 %v798_v4 }
  0x2a   : > { %661 = vmatpush3.msra.mxu0 %v257_v43  ;;  %721 = vmatpush3.msra.mxu1 %v470_v48 }
  0x2b   : > { %662 = vmatprep.subr.mxu0 %v272_v44  ;;  %722 = vmatprep.subr.mxu1 %v798_v4 }
  0x2c   : > { %663 = vmatpush3.msra.mxu0 %v256_v46  ;;  %744 = vmatprep.mubr.msk.f32.mxu1 %vm799_vm0, %v798_v4 }
  0x2d   : > { %369 = vmatmul.mubr.f32.vlgmr.msra.gmra.mxu0 %v297_v47  ;;  %723 = vmatpush3.msra.mxu1 %v469_v49 }
  0x2e   : > { %724 = vmatprep.subr.mxu1 %v798_v4 }
  0x2f   : > { %725 = vmatpush3.msra.mxu1 %v468_v50 }
  0x30   : > { %726 = vmatprep.subr.mxu1 %v798_v4 }
  0x31   : > { %727 = vmatpush3.msra.mxu1 %v467_v51 }
  0x32   : > { %728 = vmatprep.subr.mxu1 %v798_v4 }
  0x33   : > { %729 = vmatpush3.msra.mxu1 %v466_v52 }
  0x34   : > { %730 = vmatprep.subr.mxu1 %v798_v4 }
  0x35   : > { %731 = vmatpush3.msra.mxu1 %v465_v53 }
  0x36   : > { %732 = vmatprep.subr.mxu1 %v798_v4 }
  0x37   : > { %733 = vmatpush3.msra.mxu1 %v464_v54 }
  0x38   : > { %734 = vmatprep.subr.mxu1 %v798_v4 }
  0x39   : > { %735 = vmatpush3.msra.mxu1 %v463_v55 }
  0x3a   : > { %736 = vmatprep.subr.mxu1 %v798_v4 }
  0x3b   : > { %737 = vmatpush3.msra.mxu1 %v462_v56 }
  0x3c   : > { %738 = vmatprep.subr.mxu1 %v798_v4 }
  0x3d   : > { %739 = vmatpush3.msra.mxu1 %v461_v57 }
  0x3e   : > { %740 = vmatprep.subr.mxu1 %v798_v4 }
  0x3f   : > { %741 = vmatpush3.msra.mxu1 %v460_v58 }
  0x40   : > { %742 = vmatprep.subr.mxu1 %v798_v4  ;;  %v629_v4 = vld [vmem:[%s1080_s4] ss:$0 sm:$0xff] }
  0x41   : > { %743 = vmatpush3.msra.mxu1 %v459_v59 }
  0xe0   : > { %v440_v60 = vpop.f32.mrf.mxu1 }
  0xe2   : > { %v711_v61 = vpop.f32.mrf.mxu1 }
  0xed   : > { %v664_v62 = vpop.f32.mrf.mxu0 }
  0xef   : > { %v665_v63 = vpop.f32.mrf.mxu0 }
  0xf0   : > { %v666_v0 = vadd.f32 %v665_v63, %v664_v62 }
  0xf2   : > { %v441_v2 = vadd.f32 %v666_v0, %v440_v60 }
  0xf4   : > { %v457_v3 = vadd.f32 %v628_v1, %v441_v2 }
  0xf6   : > { %v458_v5 = vmax.f32 %v457_v3, 0.0 }
  0xf8   : > { %745 = vmatmul.mubr.f32.vlgmr.msra.gmra.mxu1 %v458_v5 }
 0x1b8   : > { %v548_v6 = vpop.f32.mrf.mxu1 }
 0x1b9   : > { %v549_v7 = vadd.f32 %v629_v4, %v548_v6 }
 0x1ba   : > { %v746_v8 = vpop.f32.mrf.mxu1 }
 0x1bb   : > { %552 = vst.msk [vmem:[%s250_s16] sm:$0xff] %vm300_vm1, %v549_v7 }
 0x1bc PF: > { %s15_s20 = sadd.s32 1, %s796_s20   ;;  %s1082_s18 = smov %s792_s19 }
 0x1bd   : > { %p12_p5 = scmp.ge.s32.totalorder %s15_s20, 4   ;;  %s1083_s19 = smov %s1085_s21 }
 0x1bf   :  { %14 = sbr.rel (!%p12_p5) target bundleno = 2 (0x2), region = 78 }

// kernel: run_forward.3
= control target key start
LH: loop header
LB: loop body
LE: loop exit
PB: predicated region body
PF: predicated region fallthrough
CT: control target
= control target key end

     0   :  { %vm36_vm0 = vcmask 1041408   ;;  %v271_v0 = vmov 0.0   ;;  %vm272_vm1 = vmmov 0   ;;  %vm24_vm2 = vcmask 523264   ;;  %s355_s1 = inlined_call_operand.vmem [shape: f32[26,64], index: 1, kind: input, shape index: {}]   ;;  %s356_s0 = inlined_call_operand.vmem [shape: f32[8,26], index: 0, kind: input, shape index: {}]   ;;  %s357_s3 = inlined_call_operand.vmem [shape: f32[64,64], index: 3, kind: input, shape index: {}]   ;;  %s358_s2 = inlined_call_operand.vmem [shape: f32[1,64], index: 2, kind: input, shape index: {}]   ;;  %s359_s4 = inlined_call_operand.vmem [shape: f32[1,64], index: 4, kind: input, shape index: {}]   ;;  %s360_s5 = inlined_call_operand.vmem [shape: f32[8,64], index: 5, kind: output, shape index: {}]  }
   0x1   :  { %239 = vmatprep.subr.mxu0 %v271_v0  ;;  %v29_v1 = vld [vmem:[%s355_s1 + $0x18] sm:$0x3]  ;;  %v28_v2 = vld [vmem:[%s355_s1 + $0x10] sm:$0xff]  ;;  %247 = vmatprep.mubr.msk.f32.mxu0 %vm272_vm1, %v271_v0  ;;  %25 = vst.msk [vmem:[#allocation2] sm:$0xff] %vm24_vm2, %v271_v0  ;;  %v27_v3 = vld [vmem:[%s355_s1 + $0x8] sm:$0xff]  ;;  %vm32_vm3 = vcmask 211968  }
   0x2   :  { %240 = vmatpush3.msk.msra.mxu0 %vm36_vm0, %v29_v1  ;;  %250 = vmatprep.subr.mxu1 %v271_v0  ;;  %v26_v4 = vld [vmem:[%s355_s1] sm:$0xff]  ;;  %v133_v6 = vld [vmem:[%s357_s3 + $0x38] sm:$0xff]  ;;  %v132_v7 = vld [vmem:[%s357_s3 + $0x30] sm:$0xff] }
   0x3   :  { %241 = vmatprep.subr.mxu0 %v271_v0  ;;  %266 = vmatprep.mubr.msk.f32.mxu1 %vm272_vm1, %v271_v0  ;;  %v31_v5 = vld [vmem:[%s356_s0] sm:$0xff]  ;;  %v131_v8 = vld [vmem:[%s357_s3 + $0x28] sm:$0xff]  ;;  %v129_v10 = vld [vmem:[%s357_s3 + $0x18] sm:$0xff] }
   0x4   :  { %242 = vmatpush3.msra.mxu0 %v28_v2  ;;  %251 = vmatpush3.msra.mxu1 %v133_v6  ;;  %v130_v9 = vld [vmem:[%s357_s3 + $0x20] sm:$0xff]  ;;  %v128_v11 = vld [vmem:[%s357_s3 + $0x10] sm:$0xff]  ;;  %v127_v12 = vld [vmem:[%s357_s3 + $0x8] sm:$0xff] }
   0x5   :  { %243 = vmatprep.subr.mxu0 %v271_v0  ;;  %252 = vmatprep.subr.mxu1 %v271_v0  ;;  %v126_v13 = vld [vmem:[%s357_s3] sm:$0xff] }
   0x6   :  { %244 = vmatpush3.msra.mxu0 %v27_v3  ;;  %253 = vmatpush3.msra.mxu1 %v132_v7  ;;  %v222_v18 = vld [vmem:[%s358_s2] ss:$0 sm:$0xff] }
   0x7   :  { %245 = vmatprep.subr.mxu0 %v271_v0  ;;  %254 = vmatprep.subr.mxu1 %v271_v0  ;;  %v223_v22 = vld [vmem:[%s359_s4] ss:$0 sm:$0xff] }
   0x8   :  { %246 = vmatpush3.msra.mxu0 %v26_v4  ;;  %255 = vmatpush3.msra.mxu1 %v131_v8  ;;  %v30_v14 = vld [vmem:[#allocation2] sm:$0xff] }
   0x9   :  { %248 = vmatmul.mubr.msk.f32.vlgmr.msra.gmra.mxu0 %vm32_vm3, %v31_v5  ;;  %256 = vmatprep.subr.mxu1 %v271_v0 }
   0xa   :  { %257 = vmatpush3.msra.mxu1 %v130_v9 }
   0xb   :  { %258 = vmatprep.subr.mxu1 %v271_v0 }
   0xc   :  { %259 = vmatpush3.msra.mxu1 %v129_v10 }
   0xd   :  { %260 = vmatprep.subr.mxu1 %v271_v0 }
   0xe   :  { %261 = vmatpush3.msra.mxu1 %v128_v11 }
   0xf   :  { %262 = vmatprep.subr.mxu1 %v271_v0 }
  0x10   :  { %263 = vmatpush3.msra.mxu1 %v127_v12 }
  0x11   :  { %264 = vmatprep.subr.mxu1 %v271_v0 }
  0x12   :  { %265 = vmatpush3.msra.mxu1 %v126_v13 }
  0xc9   :  { %v106_v15 = vpop.f32.mrf.mxu0 }
  0xca   :  { %v110_v16 = vadd.f32 %v106_v15, %v30_v14 }
  0xcb   :  { %v249_v17 = vpop.f32.mrf.mxu0 }
  0xcc   :  { %112 = vst.msk [vmem:[#allocation2] sm:$0xff] %vm24_vm2, %v110_v16 }
  0xd3   :  { %v116_v19 = vld [vmem:[#allocation2] sm:$0xff] }
  0xd4   :  { %v124_v20 = vadd.f32 %v222_v18, %v116_v19 }
  0xd6   :  { %v125_v21 = vmax.f32 %v124_v20, 0.0 }
  0xd8   :  { %267 = vmatmul.mubr.msk.f32.vlgmr.msra.gmra.mxu1 %vm24_vm2, %v125_v21 }
 0x198   :  { %v210_v23 = vpop.f32.mrf.mxu1 }
 0x199   :  { %v211_v24 = vadd.f32 %v223_v22, %v210_v23 }
 0x19a   :  { %v268_v25 = vpop.f32.mrf.mxu1 }
 0x19b   :  { %v214_v26 = vmax.f32 %v211_v24, 0.0 }
 0x19d   :  { %215 = vst.msk [vmem:[%s360_s5] sm:$0xff] %vm24_vm2, %v214_v26 }

// kernel: squeeze.5
= control target key start
LH: loop header
LB: loop body
LE: loop exit
PB: predicated region body
PF: predicated region fallthrough
CT: control target
= control target key end

     0   :  { %vm8_vm0 = vcmask 15360   ;;  %s33_s8 = smov 124   ;;  %s50_s0 = inlined_call_operand.vmem [shape: f32[6], index: 0, kind: input, shape index: {}]   ;;  %s51_s1 = inlined_call_operand.vmem [shape: f32[3,2], index: 1, kind: output, shape index: {}]  }
   0x1   :  { %v5_v0 = vld [vmem:[%s50_s0] sm:$0x1]  ;;  %s32_s0 = smov 126  }
   0x2   :  { %6 = vst [vmem:[#allocation1] sm:$0x1] %v5_v0 }
   0x9   :  { %v10_v1 = vld [vmem:[#allocation1] sm:$0x1]  }
   0xa   :  { %v7_v2 = vld [vmem:[#allocation1] sm:$0x1]   ;;  %11 = vrot.lane.b32.xlu0 %v10_v1, %s32_s0 }
   0xb   :  { %9 = vst.msk [vmem:[#allocation0] sm:$0x1] %vm8_vm0, %v7_v2   ;;  %v16_v3 = vld [vmem:[#allocation1] sm:$0x1]  }
   0xe   :  { %17 = vrot.lane.b32.xlu0 %v16_v3, %s33_s8 }
  0x7c   :  { %v12_v4 = vpop.permute.xlu0 %11  }
  0x7d   :  { %15 = vst.msk [vmem:[#allocation0 + $0x1] sm:$0x1] %vm8_vm0, %v12_v4  }
  0x80   :  { %v18_v5 = vpop.permute.xlu0 %17  }
  0x81   :  { %21 = vst.msk [vmem:[#allocation0 + $0x2] sm:$0x1] %vm8_vm0, %v18_v5  }
  0x88   :  { %v26_v6 = vld [vmem:[#allocation0] sm:$0xf] }
  0x89   :  { %29 = vst [vmem:[%s51_s1] sm:$0xf] %v26_v6 }

// kernel: run_forward.5
= control target key start
LH: loop header
LB: loop body
LE: loop exit
PB: predicated region body
PF: predicated region fallthrough
CT: control target
= control target key end

     0   :  { %14 = vsyncpa [#allocation4], 0  ;;  %s1221_s27 = smov 0   ;;  %s1223_s28 = smov 0   ;;  %s1726_s0 = inlined_call_operand.vmem [shape: f32[8,2560], index: 0, kind: input, shape index: {}]   ;;  %s1727_s1 = inlined_call_operand.vmem [shape: f32[2560,256], index: 1, kind: input, shape index: {}]   ;;  %s1728_s2 = inlined_call_operand.vmem [shape: f32[1,256], index: 2, kind: input, shape index: {}]   ;;  %s1729_s3 = inlined_call_operand.vmem [shape: f32[256,256], index: 3, kind: input, shape index: {}]   ;;  %s1730_s4 = inlined_call_operand.vmem [shape: f32[1,256], index: 4, kind: input, shape index: {}]   ;;  %s1731_s5 = inlined_call_operand.vmem [shape: f32[256,24], index: 5, kind: input, shape index: {}]   ;;  %s1732_s6 = inlined_call_operand.vmem [shape: f32[1,24], index: 6, kind: input, shape index: {}]   ;;  %s1733_s7 = inlined_call_operand.vmem [shape: f32[8,24], index: 7, kind: output, shape index: {0}]   ;;  %s1734_s8 = inlined_call_operand.hbm [shape: f32[8,256], index: 8, kind: output, shape index: {1}]  }
   0x1   :  { %s1225_s29 = smov 0  }
   0x2 LB: > { %s1037_s30 = sadd.s32 4294967295, %s1172_s29   ;;  %s29_s9 = sadd.s32 1, %s1168_s28  ;;  %s1172_s29 = sphi %s1225_s29, %s20_s29   ;;  %s1168_s28 = sphi %s1223_s28, %s1737_s28   ;;  %s1164_s27 = sphi %s1221_s27, %s1736_s27  }
   0x3   : > { %p30_p0 = scmp.ge.s32.totalorder %s29_s9, 5  ;;  %p1040_p1 = scmp.ge.s32.totalorder %s1172_s29, 1 }
   0x4   : > { %p297_p2 = scmp.lt.s32.totalorder %s1172_s29, 6 }
   0x5   : > { %s1739_s9 = smov (%p30_p0, %s29_s9), 0 }
   0x6   : > { %p298_p3 = pnand %p1040_p1, %p297_p2 }
   0x7   : > { %s1041_s10 = sshll.u32 (!%p298_p3), %s1164_s27, 2  ;;  %s1043_s11 = sshll.u32 (!%p298_p3), %s1164_s27, 6 }
   0x8   : > { %301 = sbr.rel (%p298_p3) target bundleno = 770 (0x302), region = 48  ;;  %p343_p4 = scmp.lt.s32.totalorder (!%p298_p3), %s1041_s10, 19 }
   0x9   : > { %p351_p5 = scmp.lt.s32.totalorder (!%p298_p3), %s1043_s11, 319  ;;  %p1046_p6 = scmp.ne.s32.totalorder (!%p298_p3), %s1164_s27, 0 }
   0xd   : > { %s1741_s10 = smov (!%p343_p4, %s1041_s10), 19  ;;  %s1743_s11 = smov (!%p351_p5, %s1043_s11), 319 }
   0xe   : > { %s1042_s12 = sshll.u32 %s1741_s10, 3  ;;  %s1054_s16 = sshll.u32 %s1743_s11, 4 }
   0xf   : > { %s1247_s15 = scalar_lea.vmem %s1726_s0, %s1042_s12  ;;  %s1252_s19 = scalar_lea.vmem %s1727_s1, %s1054_s16 }
  0x10   : > { %364 = sbr.rel (%p1046_p6) target bundleno = 23 (0x17), region = 52 }
  0x15   : > { %v1174_v0 = vmov 0.0  }
  0x16   : > { %365 = vst [vmem:[#allocation2] sm:$0xff] %v1174_v0  ;;  %366 = vst [vmem:[#allocation2 + $0x8] sm:$0xff] %v1174_v0 }
  0x17 PF: > { %v398_v1 = vld [vmem:[%s1252_s19 + $0xf8] sm:$0xff]  ;;  %v397_v3 = vld [vmem:[%s1252_s19 + $0xf0] sm:$0xff]  ;;  %v396_v5 = vld [vmem:[%s1252_s19 + $0xe8] sm:$0xff]  ;;  %p1047_p7 = scmp.ne.s32.totalorder %s1164_s27, 4 }
  0x18   : > { %v462_v2 = vld [vmem:[%s1252_s19 + $0x2f8] sm:$0xff]  ;;  %501 = vmatprep.subr.mxu0 %v398_v1  ;;  %v461_v4 = vld [vmem:[%s1252_s19 + $0x2f0] sm:$0xff]  ;;  %v460_v6 = vld [vmem:[%s1252_s19 + $0x2e8] sm:$0xff] }
  0x19   : > { %572 = vmatprep.subr.mxu1 %v462_v2  ;;  %502 = vmatpush1.msra.mxu0 %v397_v3  ;;  %v395_v7 = vld [vmem:[%s1252_s19 + $0xe0] sm:$0xff]  ;;  %v394_v9 = vld [vmem:[%s1252_s19 + $0xd8] sm:$0xff]  ;;  %v393_v11 = vld [vmem:[%s1252_s19 + $0xd0] sm:$0xff] }
  0x1a   : > { %573 = vmatpush1.msra.mxu1 %v461_v4  ;;  %v459_v8 = vld [vmem:[%s1252_s19 + $0x2e0] sm:$0xff]  ;;  %503 = vmatprep.subr.mxu0 %v396_v5  ;;  %v458_v10 = vld [vmem:[%s1252_s19 + $0x2d8] sm:$0xff]  ;;  %v457_v12 = vld [vmem:[%s1252_s19 + $0x2d0] sm:$0xff] }
  0x1b   : > { %574 = vmatprep.subr.mxu1 %v460_v6  ;;  %504 = vmatpush1.msra.mxu0 %v395_v7  ;;  %v392_v13 = vld [vmem:[%s1252_s19 + $0xc8] sm:$0xff]  ;;  %v391_v15 = vld [vmem:[%s1252_s19 + $0xc0] sm:$0xff]  ;;  %v390_v17 = vld [vmem:[%s1252_s19 + $0xb8] sm:$0xff] }
  0x1c   : > { %575 = vmatpush1.msra.mxu1 %v459_v8  ;;  %v456_v14 = vld [vmem:[%s1252_s19 + $0x2c8] sm:$0xff]  ;;  %505 = vmatprep.subr.mxu0 %v394_v9  ;;  %v455_v16 = vld [vmem:[%s1252_s19 + $0x2c0] sm:$0xff]  ;;  %v454_v18 = vld [vmem:[%s1252_s19 + $0x2b8] sm:$0xff] }
  0x1d   : > { %576 = vmatprep.subr.mxu1 %v458_v10  ;;  %506 = vmatpush1.msra.mxu0 %v393_v11  ;;  %v389_v19 = vld [vmem:[%s1252_s19 + $0xb0] sm:$0xff]  ;;  %v388_v21 = vld [vmem:[%s1252_s19 + $0xa8] sm:$0xff]  ;;  %v387_v23 = vld [vmem:[%s1252_s19 + $0xa0] sm:$0xff] }
  0x1e   : > { %577 = vmatpush1.msra.mxu1 %v457_v12  ;;  %507 = vmatprep.subr.mxu0 %v392_v13  ;;  %v453_v20 = vld [vmem:[%s1252_s19 + $0x2b0] sm:$0xff]  ;;  %v452_v22 = vld [vmem:[%s1252_s19 + $0x2a8] sm:$0xff]  ;;  %v451_v24 = vld [vmem:[%s1252_s19 + $0x2a0] sm:$0xff] }
  0x1f   : > { %578 = vmatprep.subr.mxu1 %v456_v14  ;;  %508 = vmatpush1.msra.mxu0 %v391_v15  ;;  %v386_v25 = vld [vmem:[%s1252_s19 + $0x98] sm:$0xff]  ;;  %v385_v27 = vld [vmem:[%s1252_s19 + $0x90] sm:$0xff]  ;;  %v384_v29 = vld [vmem:[%s1252_s19 + $0x88] sm:$0xff] }
  0x20   : > { %579 = vmatpush1.msra.mxu1 %v455_v16  ;;  %509 = vmatprep.subr.mxu0 %v390_v17  ;;  %v450_v26 = vld [vmem:[%s1252_s19 + $0x298] sm:$0xff]  ;;  %v449_v28 = vld [vmem:[%s1252_s19 + $0x290] sm:$0xff]  ;;  %v448_v30 = vld [vmem:[%s1252_s19 + $0x288] sm:$0xff] }
  0x21   : > { %580 = vmatprep.subr.mxu1 %v454_v18  ;;  %510 = vmatpush1.msra.mxu0 %v389_v19  ;;  %v383_v31 = vld [vmem:[%s1252_s19 + $0x80] sm:$0xff]  ;;  %v382_v33 = vld [vmem:[%s1252_s19 + $0x78] sm:$0xff]  ;;  %v381_v35 = vld [vmem:[%s1252_s19 + $0x70] sm:$0xff] }
  0x22   : > { %581 = vmatpush1.msra.mxu1 %v453_v20  ;;  %511 = vmatprep.subr.mxu0 %v388_v21  ;;  %v447_v32 = vld [vmem:[%s1252_s19 + $0x280] sm:$0xff]  ;;  %v446_v34 = vld [vmem:[%s1252_s19 + $0x278] sm:$0xff]  ;;  %v445_v36 = vld [vmem:[%s1252_s19 + $0x270] sm:$0xff] }
  0x23   : > { %582 = vmatprep.subr.mxu1 %v452_v22  ;;  %512 = vmatpush1.msra.mxu0 %v387_v23  ;;  %v380_v37 = vld [vmem:[%s1252_s19 + $0x68] sm:$0xff]  ;;  %v379_v39 = vld [vmem:[%s1252_s19 + $0x60] sm:$0xff]  ;;  %v378_v41 = vld [vmem:[%s1252_s19 + $0x58] sm:$0xff] }
  0x24   : > { %583 = vmatpush1.msra.mxu1 %v451_v24  ;;  %513 = vmatprep.subr.mxu0 %v386_v25  ;;  %v444_v38 = vld [vmem:[%s1252_s19 + $0x268] sm:$0xff]  ;;  %v443_v40 = vld [vmem:[%s1252_s19 + $0x260] sm:$0xff]  ;;  %v442_v42 = vld [vmem:[%s1252_s19 + $0x258] sm:$0xff] }
  0x25   : > { %584 = vmatprep.subr.mxu1 %v450_v26  ;;  %514 = vmatpush1.msra.mxu0 %v385_v27  ;;  %v377_v43 = vld [vmem:[%s1252_s19 + $0x50] sm:$0xff]  ;;  %v376_v45 = vld [vmem:[%s1252_s19 + $0x48] sm:$0xff]  ;;  %v375_v47 = vld [vmem:[%s1252_s19 + $0x40] sm:$0xff] }
  0x26   : > { %585 = vmatpush1.msra.mxu1 %v449_v28  ;;  %515 = vmatprep.subr.mxu0 %v384_v29  ;;  %v441_v44 = vld [vmem:[%s1252_s19 + $0x250] sm:$0xff]  ;;  %v440_v46 = vld [vmem:[%s1252_s19 + $0x248] sm:$0xff]  ;;  %v439_v48 = vld [vmem:[%s1252_s19 + $0x240] sm:$0xff] }
  0x27   : > { %586 = vmatprep.subr.mxu1 %v448_v30  ;;  %516 = vmatpush1.msra.mxu0 %v383_v31  ;;  %v374_v49 = vld [vmem:[%s1252_s19 + $0x38] sm:$0xff]  ;;  %v373_v51 = vld [vmem:[%s1252_s19 + $0x30] sm:$0xff]  ;;  %v372_v53 = vld [vmem:[%s1252_s19 + $0x28] sm:$0xff] }
  0x28   : > { %587 = vmatpush1.msra.mxu1 %v447_v32  ;;  %517 = vmatprep.subr.mxu0 %v382_v33  ;;  %v438_v50 = vld [vmem:[%s1252_s19 + $0x238] sm:$0xff]  ;;  %v437_v52 = vld [vmem:[%s1252_s19 + $0x230] sm:$0xff]  ;;  %v436_v54 = vld [vmem:[%s1252_s19 + $0x228] sm:$0xff] }
  0x29   : > { %588 = vmatprep.subr.mxu1 %v446_v34  ;;  %518 = vmatpush1.msra.mxu0 %v381_v35  ;;  %v371_v55 = vld [vmem:[%s1252_s19 + $0x20] sm:$0xff]  ;;  %v370_v57 = vld [vmem:[%s1252_s19 + $0x18] sm:$0xff]  ;;  %v369_v59 = vld [vmem:[%s1252_s19 + $0x10] sm:$0xff] }
  0x2a   : > { %589 = vmatpush1.msra.mxu1 %v445_v36  ;;  %519 = vmatprep.subr.mxu0 %v380_v37  ;;  %v435_v56 = vld [vmem:[%s1252_s19 + $0x220] sm:$0xff]  ;;  %v434_v58 = vld [vmem:[%s1252_s19 + $0x218] sm:$0xff]  ;;  %v433_v60 = vld [vmem:[%s1252_s19 + $0x210] sm:$0xff] }
  0x2b   : > { %590 = vmatprep.subr.mxu1 %v444_v38  ;;  %520 = vmatpush1.msra.mxu0 %v379_v39  ;;  %v368_v61 = vld [vmem:[%s1252_s19 + $0x8] sm:$0xff]  ;;  %v367_v63 = vld [vmem:[%s1252_s19] sm:$0xff]  ;;  %v430_v1 = vld [vmem:[%s1252_s19 + $0x1f8] sm:$0xff] }
  0x2c   : > { %591 = vmatpush1.msra.mxu1 %v443_v40  ;;  %521 = vmatprep.subr.mxu0 %v378_v41  ;;  %v432_v62 = vld [vmem:[%s1252_s19 + $0x208] sm:$0xff]  ;;  %v431_v0 = vld [vmem:[%s1252_s19 + $0x200] sm:$0xff]  ;;  %v494_v2 = vld [vmem:[%s1252_s19 + $0x3f8] sm:$0xff] }
  0x2d   : > { %592 = vmatprep.subr.mxu1 %v442_v42  ;;  %522 = vmatpush1.msra.mxu0 %v377_v43  ;;  %v429_v3 = vld [vmem:[%s1252_s19 + $0x1f0] sm:$0xff]  ;;  %v428_v5 = vld [vmem:[%s1252_s19 + $0x1e8] sm:$0xff]  ;;  %v427_v7 = vld [vmem:[%s1252_s19 + $0x1e0] sm:$0xff] }
  0x2e   : > { %593 = vmatpush1.msra.mxu1 %v441_v44  ;;  %523 = vmatprep.subr.mxu0 %v376_v45  ;;  %v493_v4 = vld [vmem:[%s1252_s19 + $0x3f0] sm:$0xff]  ;;  %v492_v6 = vld [vmem:[%s1252_s19 + $0x3e8] sm:$0xff]  ;;  %v491_v8 = vld [vmem:[%s1252_s19 + $0x3e0] sm:$0xff] }
  0x2f   : > { %594 = vmatprep.subr.mxu1 %v440_v46  ;;  %524 = vmatpush1.msra.mxu0 %v375_v47  ;;  %v426_v9 = vld [vmem:[%s1252_s19 + $0x1d8] sm:$0xff]  ;;  %v425_v11 = vld [vmem:[%s1252_s19 + $0x1d0] sm:$0xff]  ;;  %v424_v13 = vld [vmem:[%s1252_s19 + $0x1c8] sm:$0xff] }
  0x30   : > { %595 = vmatpush1.msra.mxu1 %v439_v48  ;;  %525 = vmatprep.subr.mxu0 %v374_v49  ;;  %v490_v10 = vld [vmem:[%s1252_s19 + $0x3d8] sm:$0xff]  ;;  %v489_v12 = vld [vmem:[%s1252_s19 + $0x3d0] sm:$0xff]  ;;  %v488_v14 = vld [vmem:[%s1252_s19 + $0x3c8] sm:$0xff] }
  0x31   : > { %596 = vmatprep.subr.mxu1 %v438_v50  ;;  %526 = vmatpush1.msra.mxu0 %v373_v51  ;;  %v423_v15 = vld [vmem:[%s1252_s19 + $0x1c0] sm:$0xff]  ;;  %v422_v17 = vld [vmem:[%s1252_s19 + $0x1b8] sm:$0xff]  ;;  %v421_v19 = vld [vmem:[%s1252_s19 + $0x1b0] sm:$0xff] }
  0x32   : > { %597 = vmatpush1.msra.mxu1 %v437_v52  ;;  %527 = vmatprep.subr.mxu0 %v372_v53  ;;  %v487_v16 = vld [vmem:[%s1252_s19 + $0x3c0] sm:$0xff]  ;;  %v486_v18 = vld [vmem:[%s1252_s19 + $0x3b8] sm:$0xff]  ;;  %v485_v20 = vld [vmem:[%s1252_s19 + $0x3b0] sm:$0xff] }
  0x33   : > { %598 = vmatprep.subr.mxu1 %v436_v54  ;;  %528 = vmatpush1.msra.mxu0 %v371_v55  ;;  %v420_v21 = vld [vmem:[%s1252_s19 + $0x1a8] sm:$0xff]  ;;  %v419_v23 = vld [vmem:[%s1252_s19 + $0x1a0] sm:$0xff]  ;;  %v418_v25 = vld [vmem:[%s1252_s19 + $0x198] sm:$0xff] }
  0x34   : > { %599 = vmatpush1.msra.mxu1 %v435_v56  ;;  %529 = vmatprep.subr.mxu0 %v370_v57  ;;  %v484_v22 = vld [vmem:[%s1252_s19 + $0x3a8] sm:$0xff]  ;;  %v483_v24 = vld [vmem:[%s1252_s19 + $0x3a0] sm:$0xff]  ;;  %v482_v26 = vld [vmem:[%s1252_s19 + $0x398] sm:$0xff] }
  0x35   : > { %600 = vmatprep.subr.mxu1 %v434_v58  ;;  %530 = vmatpush1.msra.mxu0 %v369_v59  ;;  %v417_v27 = vld [vmem:[%s1252_s19 + $0x190] sm:$0xff]  ;;  %v416_v29 = vld [vmem:[%s1252_s19 + $0x188] sm:$0xff]  ;;  %v415_v31 = vld [vmem:[%s1252_s19 + $0x180] sm:$0xff] }
  0x36   : > { %601 = vmatpush1.msra.mxu1 %v433_v60  ;;  %531 = vmatprep.subr.mxu0 %v368_v61  ;;  %v481_v28 = vld [vmem:[%s1252_s19 + $0x390] sm:$0xff]  ;;  %v480_v30 = vld [vmem:[%s1252_s19 + $0x388] sm:$0xff]  ;;  %v479_v32 = vld [vmem:[%s1252_s19 + $0x380] sm:$0xff] }
  0x37   : > { %602 = vmatprep.subr.mxu1 %v432_v62  ;;  %532 = vmatpush1.msra.mxu0 %v367_v63  ;;  %v414_v33 = vld [vmem:[%s1252_s19 + $0x178] sm:$0xff]  ;;  %v413_v35 = vld [vmem:[%s1252_s19 + $0x170] sm:$0xff]  ;;  %v412_v37 = vld [vmem:[%s1252_s19 + $0x168] sm:$0xff] }
  0x38   : > { %603 = vmatpush1.msra.mxu1 %v431_v0  ;;  %533 = vmatprep.subr.mxu0 %v430_v1  ;;  %v478_v34 = vld [vmem:[%s1252_s19 + $0x378] sm:$0xff]  ;;  %v477_v36 = vld [vmem:[%s1252_s19 + $0x370] sm:$0xff]  ;;  %v476_v38 = vld [vmem:[%s1252_s19 + $0x368] sm:$0xff] }
  0x39   : > { %604 = vmatprep.subr.mxu1 %v494_v2  ;;  %534 = vmatpush2.msra.mxu0 %v429_v3  ;;  %v411_v39 = vld [vmem:[%s1252_s19 + $0x160] sm:$0xff]  ;;  %v410_v41 = vld [vmem:[%s1252_s19 + $0x158] sm:$0xff]  ;;  %v409_v43 = vld [vmem:[%s1252_s19 + $0x150] sm:$0xff] }
  0x3a   : > { %605 = vmatpush2.msra.mxu1 %v493_v4  ;;  %535 = vmatprep.subr.mxu0 %v428_v5  ;;  %v475_v40 = vld [vmem:[%s1252_s19 + $0x360] sm:$0xff]  ;;  %v474_v42 = vld [vmem:[%s1252_s19 + $0x358] sm:$0xff]  ;;  %v473_v44 = vld [vmem:[%s1252_s19 + $0x350] sm:$0xff] }
  0x3b   : > { %606 = vmatprep.subr.mxu1 %v492_v6  ;;  %536 = vmatpush2.msra.mxu0 %v427_v7  ;;  %v408_v45 = vld [vmem:[%s1252_s19 + $0x148] sm:$0xff]  ;;  %v407_v47 = vld [vmem:[%s1252_s19 + $0x140] sm:$0xff]  ;;  %v406_v49 = vld [vmem:[%s1252_s19 + $0x138] sm:$0xff] }
  0x3c   : > { %607 = vmatpush2.msra.mxu1 %v491_v8  ;;  %537 = vmatprep.subr.mxu0 %v426_v9  ;;  %v472_v46 = vld [vmem:[%s1252_s19 + $0x348] sm:$0xff]  ;;  %v471_v48 = vld [vmem:[%s1252_s19 + $0x340] sm:$0xff]  ;;  %v470_v50 = vld [vmem:[%s1252_s19 + $0x338] sm:$0xff] }
  0x3d   : > { %608 = vmatprep.subr.mxu1 %v490_v10  ;;  %538 = vmatpush2.msra.mxu0 %v425_v11  ;;  %v405_v51 = vld [vmem:[%s1252_s19 + $0x130] sm:$0xff]  ;;  %v404_v53 = vld [vmem:[%s1252_s19 + $0x128] sm:$0xff]  ;;  %v403_v55 = vld [vmem:[%s1252_s19 + $0x120] sm:$0xff] }
  0x3e   : > { %609 = vmatpush2.msra.mxu1 %v489_v12  ;;  %539 = vmatprep.subr.mxu0 %v424_v13  ;;  %v469_v52 = vld [vmem:[%s1252_s19 + $0x330] sm:$0xff]  ;;  %v468_v54 = vld [vmem:[%s1252_s19 + $0x328] sm:$0xff]  ;;  %v467_v56 = vld [vmem:[%s1252_s19 + $0x320] sm:$0xff] }
  0x3f   : > { %610 = vmatprep.subr.mxu1 %v488_v14  ;;  %540 = vmatpush2.msra.mxu0 %v423_v15  ;;  %v402_v57 = vld [vmem:[%s1252_s19 + $0x118] sm:$0xff]  ;;  %v401_v59 = vld [vmem:[%s1252_s19 + $0x110] sm:$0xff]  ;;  %v400_v61 = vld [vmem:[%s1252_s19 + $0x108] sm:$0xff] }
  0x40   : > { %611 = vmatpush2.msra.mxu1 %v487_v16  ;;  %541 = vmatprep.subr.mxu0 %v422_v17  ;;  %v466_v58 = vld [vmem:[%s1252_s19 + $0x318] sm:$0xff]  ;;  %v465_v60 = vld [vmem:[%s1252_s19 + $0x310] sm:$0xff]  ;;  %v464_v62 = vld [vmem:[%s1252_s19 + $0x308] sm:$0xff] }
  0x41   : > { %612 = vmatprep.subr.mxu1 %v486_v18  ;;  %542 = vmatpush2.msra.mxu0 %v421_v19  ;;  %v399_v63 = vld [vmem:[%s1252_s19 + $0x100] sm:$0xff]  ;;  %v498_v0 = vld [vmem:[%s1247_s15 + $0x8] sm:$0xff]  ;;  %v500_v2 = vld [vmem:[%s1247_s15 + $0x18] sm:$0xff] }
  0x42   : > { %613 = vmatpush2.msra.mxu1 %v485_v20  ;;  %543 = vmatprep.subr.mxu0 %v420_v21  ;;  %v463_v1 = vld [vmem:[%s1252_s19 + $0x300] sm:$0xff]  ;;  %v499_v4 = vld [vmem:[%s1247_s15 + $0x10] sm:$0xff]  ;;  %v496_v10 = vld [vmem:[#allocation2 + $0x8] sm:$0xff] }
  0x43   : > { %614 = vmatprep.subr.mxu1 %v484_v22  ;;  %544 = vmatpush2.msra.mxu0 %v419_v23  ;;  %v497_v3 = vld [vmem:[%s1247_s15] sm:$0xff] }
  0x44   : > { %615 = vmatpush2.msra.mxu1 %v483_v24  ;;  %545 = vmatprep.subr.mxu0 %v418_v25  ;;  %v495_v6 = vld [vmem:[#allocation2] sm:$0xff] }
  0x45   : > { %616 = vmatprep.subr.mxu1 %v482_v26  ;;  %546 = vmatpush2.msra.mxu0 %v417_v27 }
  0x46   : > { %617 = vmatpush2.msra.mxu1 %v481_v28  ;;  %547 = vmatprep.subr.mxu0 %v416_v29 }
  0x47   : > { %618 = vmatprep.subr.mxu1 %v480_v30  ;;  %548 = vmatpush2.msra.mxu0 %v415_v31 }
  0x48   : > { %619 = vmatpush2.msra.mxu1 %v479_v32  ;;  %549 = vmatprep.subr.mxu0 %v414_v33 }
  0x49   : > { %620 = vmatprep.subr.mxu1 %v478_v34  ;;  %550 = vmatpush2.msra.mxu0 %v413_v35 }
  0x4a   : > { %621 = vmatpush2.msra.mxu1 %v477_v36  ;;  %551 = vmatprep.subr.mxu0 %v412_v37 }
  0x4b   : > { %622 = vmatprep.subr.mxu1 %v476_v38  ;;  %552 = vmatpush2.msra.mxu0 %v411_v39 }
  0x4c   : > { %623 = vmatpush2.msra.mxu1 %v475_v40  ;;  %553 = vmatprep.subr.mxu0 %v410_v41 }
  0x4d   : > { %624 = vmatprep.subr.mxu1 %v474_v42  ;;  %554 = vmatpush2.msra.mxu0 %v409_v43 }
  0x4e   : > { %625 = vmatpush2.msra.mxu1 %v473_v44  ;;  %555 = vmatprep.subr.mxu0 %v408_v45 }
  0x4f   : > { %626 = vmatprep.subr.mxu1 %v472_v46  ;;  %556 = vmatpush2.msra.mxu0 %v407_v47 }
  0x50   : > { %627 = vmatpush2.msra.mxu1 %v471_v48  ;;  %557 = vmatprep.subr.mxu0 %v406_v49 }
  0x51   : > { %628 = vmatprep.subr.mxu1 %v470_v50  ;;  %558 = vmatpush2.msra.mxu0 %v405_v51 }
  0x52   : > { %629 = vmatpush2.msra.mxu1 %v469_v52  ;;  %559 = vmatprep.subr.mxu0 %v404_v53 }
  0x53   : > { %630 = vmatprep.subr.mxu1 %v468_v54  ;;  %560 = vmatpush2.msra.mxu0 %v403_v55 }
  0x54   : > { %631 = vmatpush2.msra.mxu1 %v467_v56  ;;  %561 = vmatprep.subr.mxu0 %v402_v57 }
  0x55   : > { %632 = vmatprep.subr.mxu1 %v466_v58  ;;  %562 = vmatpush2.msra.mxu0 %v401_v59 }
  0x56   : > { %633 = vmatpush2.msra.mxu1 %v465_v60  ;;  %563 = vmatprep.subr.mxu0 %v400_v61 }
  0x57   : > { %634 = vmatprep.subr.mxu1 %v464_v62  ;;  %564 = vmatpush2.msra.mxu0 %v399_v63 }
  0x58   : > { %565 = vmatprep.mubr.f32.mxu0 %v498_v0  ;;  %635 = vmatpush2.msra.mxu1 %v463_v1 }
  0x59   : > { %636 = vmatprep.mubr.f32.mxu1 %v500_v2  ;;  %566 = vmatmul.mubr.f32.vlgmr.msra.gmra.mxu0 %v497_v3 }
  0x5a   : > { %637 = vmatmul.mubr.f32.vlgmr.msra.gmra.mxu1 %v499_v4 }
 0x119   : > { %v567_v5 = vpop.f32.mrf.mxu0 }
 0x11a   : > { %v638_v7 = vpop.f32.mrf.mxu1 }
 0x11b   : > { %v639_v8 = vadd.f32 %v638_v7, %v567_v5  ;;  %v569_v9 = vpop.f32.mrf.mxu0 }
 0x11c   : > { %v640_v11 = vpop.f32.mrf.mxu1 }
 0x11d   : > { %v643_v12 = vadd.f32 %v639_v8, %v495_v6  ;;  %v641_v13 = vadd.f32 %v640_v11, %v569_v9  ;;  %650 = sbr.rel (%p1047_p7) target bundleno = 755 (0x2f3), region = 56 }
 0x11f   : > { %645 = vst [vmem:[#allocation2] sm:$0xff] %v643_v12  ;;  %v644_v14 = vadd.f32 %v641_v13, %v496_v10 }
 0x121   : > { %646 = vst [vmem:[#allocation2 + $0x8] sm:$0xff] %v644_v14 }
 0x122   : > { %v700_v15 = vld [vmem:[%s1729_s3 + $0xf8] sm:$0xff]  ;;  %v699_v16 = vld [vmem:[%s1729_s3 + $0xf0] sm:$0xff]  ;;  %v698_v17 = vld [vmem:[%s1729_s3 + $0xe8] sm:$0xff]  ;;  %v655_v28 = vlaneseq  ;;  %vm929_vm0 = vcmask 195584  }
 0x123   : > { %745 = vmatprep.subr.mxu0 %v700_v15  ;;  %v697_v18 = vld [vmem:[%s1729_s3 + $0xe0] sm:$0xff]  ;;  %v696_v19 = vld [vmem:[%s1729_s3 + $0xd8] sm:$0xff]  ;;  %v695_v20 = vld [vmem:[%s1729_s3 + $0xd0] sm:$0xff] }
 0x124   : > { %746 = vmatpush1.msra.mxu0 %v699_v16  ;;  %v694_v21 = vld [vmem:[%s1729_s3 + $0xc8] sm:$0xff]  ;;  %v693_v22 = vld [vmem:[%s1729_s3 + $0xc0] sm:$0xff]  ;;  %v692_v23 = vld [vmem:[%s1729_s3 + $0xb8] sm:$0xff]  ;;  %v1439_v33 = vshrl.u32 %v655_v28, 7 }
 0x125   : > { %747 = vmatprep.subr.mxu0 %v698_v17  ;;  %v691_v24 = vld [vmem:[%s1729_s3 + $0xb0] sm:$0xff]  ;;  %v690_v25 = vld [vmem:[%s1729_s3 + $0xa8] sm:$0xff]  ;;  %v689_v26 = vld [vmem:[%s1729_s3 + $0xa0] sm:$0xff] }
 0x126   : > { %748 = vmatpush1.msra.mxu0 %v697_v18  ;;  %v688_v27 = vld [vmem:[%s1729_s3 + $0x98] sm:$0xff]  ;;  %v687_v29 = vld [vmem:[%s1729_s3 + $0x90] sm:$0xff]  ;;  %v686_v30 = vld [vmem:[%s1729_s3 + $0x88] sm:$0xff]  ;;  %v661_v38 = vsub.s32 1, %v1439_v33 }
 0x127   : > { %749 = vmatprep.subr.mxu0 %v696_v19  ;;  %v685_v31 = vld [vmem:[%s1729_s3 + $0x80] sm:$0xff]  ;;  %v684_v32 = vld [vmem:[%s1729_s3 + $0x78] sm:$0xff]  ;;  %v683_v34 = vld [vmem:[%s1729_s3 + $0x70] sm:$0xff] }
 0x128   : > { %750 = vmatpush1.msra.mxu0 %v695_v20  ;;  %v682_v35 = vld [vmem:[%s1729_s3 + $0x68] sm:$0xff]  ;;  %v681_v36 = vld [vmem:[%s1729_s3 + $0x60] sm:$0xff]  ;;  %v680_v37 = vld [vmem:[%s1729_s3 + $0x58] sm:$0xff] }
 0x129   : > { %751 = vmatprep.subr.mxu0 %v694_v21  ;;  %v679_v39 = vld [vmem:[%s1729_s3 + $0x50] sm:$0xff]  ;;  %v678_v40 = vld [vmem:[%s1729_s3 + $0x48] sm:$0xff]  ;;  %v677_v41 = vld [vmem:[%s1729_s3 + $0x40] sm:$0xff] }
 0x12a   : > { %752 = vmatpush1.msra.mxu0 %v693_v22  ;;  %v652_v42 = vld [vmem:[#allocation2 + $0x8] sm:$0xff]  ;;  %v1466_v43 = vld [vmem:[%s1728_s2] sm:$0x3]  ;;  %v676_v44 = vld [vmem:[%s1729_s3 + $0x38] sm:$0xff] }
 0x12b   : > { %753 = vmatprep.subr.mxu0 %v692_v23  ;;  %v662_v45 = vrot.slane %v1466_v43, %v661_v38  ;;  %v851_v46 = vld [vmem:[%s1731_s5 + $0xf8] sm:$0xff]  ;;  %v675_v48 = vld [vmem:[%s1729_s3 + $0x30] sm:$0xff]  ;;  %v674_v51 = vld [vmem:[%s1729_s3 + $0x28] sm:$0xff] }
 0x12c   : > { %754 = vmatpush1.msra.mxu0 %v691_v24  ;;  %v835_v47 = vld [vmem:[%s1731_s5 + $0x78] sm:$0xff]  ;;  %1055 = vmatprep.subr.mxu1 %v851_v46  ;;  %v850_v49 = vld [vmem:[%s1731_s5 + $0xf0] sm:$0xff]  ;;  %v849_v53 = vld [vmem:[%s1731_s5 + $0xe8] sm:$0xff] }
 0x12d   : > { %755 = vmatprep.subr.mxu0 %v690_v25  ;;  %v834_v50 = vld [vmem:[%s1731_s5 + $0x70] sm:$0xff]  ;;  %v666_v52 = vadd.f32 %v662_v45, %v652_v42  ;;  %1056 = vmatpush3.msra.mxu1 %v835_v47  ;;  %v673_v54 = vld [vmem:[%s1729_s3 + $0x20] sm:$0xff]  ;;  %v672_v55 = vld [vmem:[%s1729_s3 + $0x18] sm:$0xff] }
 0x12e   : > { %756 = vmatpush1.msra.mxu0 %v689_v26  ;;  %1057 = vmatprep.subr.mxu1 %v850_v49  ;;  %v833_v57 = vld [vmem:[%s1731_s5 + $0x68] sm:$0xff]  ;;  %v671_v58 = vld [vmem:[%s1729_s3 + $0x10] sm:$0xff]  ;;  %v848_v59 = vld [vmem:[%s1731_s5 + $0xe0] sm:$0xff] }
 0x12f   : > { %757 = vmatprep.subr.mxu0 %v688_v27  ;;  %v668_v56 = vmax.f32 %v666_v52, 0.0  ;;  %1058 = vmatpush3.msra.mxu1 %v834_v50  ;;  %v670_v60 = vld [vmem:[%s1729_s3 + $0x8] sm:$0xff]  ;;  %v832_v61 = vld [vmem:[%s1731_s5 + $0x60] sm:$0xff]  ;;  %v847_v63 = vld [vmem:[%s1731_s5 + $0xd8] sm:$0xff] }
 0x130   : > { %758 = vmatpush1.msra.mxu0 %v687_v29  ;;  %1059 = vmatprep.subr.mxu1 %v849_v53  ;;  %v669_v62 = vld [vmem:[%s1729_s3] sm:$0xff]  ;;  %v732_v0 = vld [vmem:[%s1729_s3 + $0x1f8] sm:$0xff]  ;;  %v731_v2 = vld [vmem:[%s1729_s3 + $0x1f0] sm:$0xff] }
 0x131   : > { %759 = vmatprep.subr.mxu0 %v686_v30  ;;  %809 = vmatprep.mubr.f32.mxu0 %v668_v56  ;;  %v831_v1 = vld [vmem:[%s1731_s5 + $0x58] sm:$0xff]  ;;  %v846_v3 = vld [vmem:[%s1731_s5 + $0xd0] sm:$0xff]  ;;  %v730_v4 = vld [vmem:[%s1729_s3 + $0x1e8] sm:$0xff] }
 0x132   : > { %760 = vmatpush1.msra.mxu0 %v685_v31  ;;  %1060 = vmatpush3.msra.mxu1 %v833_v57  ;;  %v830_v5 = vld [vmem:[%s1731_s5 + $0x50] sm:$0xff]  ;;  %v729_v6 = vld [vmem:[%s1729_s3 + $0x1e0] sm:$0xff]  ;;  %v845_v7 = vld [vmem:[%s1731_s5 + $0xc8] sm:$0xff] }
 0x133   : > { %761 = vmatprep.subr.mxu0 %v684_v32  ;;  %1061 = vmatprep.subr.mxu1 %v848_v59  ;;  %v728_v8 = vld [vmem:[%s1729_s3 + $0x1d8] sm:$0xff]  ;;  %v829_v9 = vld [vmem:[%s1731_s5 + $0x48] sm:$0xff]  ;;  %v727_v10 = vld [vmem:[%s1729_s3 + $0x1d0] sm:$0xff] }
 0x134   : > { %762 = vmatpush1.msra.mxu0 %v683_v34  ;;  %1062 = vmatpush3.msra.mxu1 %v832_v61  ;;  %v844_v11 = vld [vmem:[%s1731_s5 + $0xc0] sm:$0xff]  ;;  %v726_v12 = vld [vmem:[%s1729_s3 + $0x1c8] sm:$0xff]  ;;  %v843_v15 = vld [vmem:[%s1731_s5 + $0xb8] sm:$0xff] }
 0x135   : > { %763 = vmatprep.subr.mxu0 %v682_v35  ;;  %1063 = vmatprep.subr.mxu1 %v847_v63  ;;  %v828_v13 = vld [vmem:[%s1731_s5 + $0x40] sm:$0xff]  ;;  %v724_v16 = vld [vmem:[%s1729_s3 + $0x1b8] sm:$0xff]  ;;  %v723_v18 = vld [vmem:[%s1729_s3 + $0x1b0] sm:$0xff] }
 0x136   : > { %764 = vmatpush1.msra.mxu0 %v681_v36  ;;  %1064 = vmatpush3.msra.mxu1 %v831_v1  ;;  %v725_v14 = vld [vmem:[%s1729_s3 + $0x1c0] sm:$0xff]  ;;  %v827_v17 = vld [vmem:[%s1731_s5 + $0x38] sm:$0xff]  ;;  %v842_v19 = vld [vmem:[%s1731_s5 + $0xb0] sm:$0xff]  ;;  %v657_v36 = vsub.s32 0, %v1439_v33 }
 0x137   : > { %765 = vmatprep.subr.mxu0 %v680_v37  ;;  %1065 = vmatprep.subr.mxu1 %v846_v3  ;;  %v722_v20 = vld [vmem:[%s1729_s3 + $0x1a8] sm:$0xff]  ;;  %v826_v21 = vld [vmem:[%s1731_s5 + $0x30] sm:$0xff]  ;;  %v721_v22 = vld [vmem:[%s1729_s3 + $0x1a0] sm:$0xff] }
 0x138   : > { %766 = vmatpush1.msra.mxu0 %v679_v39  ;;  %1066 = vmatpush3.msra.mxu1 %v830_v5  ;;  %v841_v23 = vld [vmem:[%s1731_s5 + $0xa8] sm:$0xff]  ;;  %v720_v24 = vld [vmem:[%s1729_s3 + $0x198] sm:$0xff]  ;;  %v719_v26 = vld [vmem:[%s1729_s3 + $0x190] sm:$0xff]  ;;  %v658_v42 = vrot.slane %v1466_v43, %v657_v36 }
 0x139   : > { %767 = vmatprep.subr.mxu0 %v678_v40  ;;  %1067 = vmatprep.subr.mxu1 %v845_v7  ;;  %v825_v25 = vld [vmem:[%s1731_s5 + $0x28] sm:$0xff]  ;;  %v840_v27 = vld [vmem:[%s1731_s5 + $0xa0] sm:$0xff]  ;;  %v716_v31 = vld [vmem:[%s1729_s3 + $0x178] sm:$0xff] }
 0x13a   : > { %768 = vmatpush1.msra.mxu0 %v677_v41  ;;  %1068 = vmatpush3.msra.mxu1 %v829_v9  ;;  %v718_v28 = vld [vmem:[%s1729_s3 + $0x188] sm:$0xff]  ;;  %v824_v29 = vld [vmem:[%s1731_s5 + $0x20] sm:$0xff]  ;;  %v715_v32 = vld [vmem:[%s1729_s3 + $0x170] sm:$0xff] }
 0x13b   : > { %769 = vmatprep.subr.mxu0 %v676_v44  ;;  %1069 = vmatprep.subr.mxu1 %v844_v11  ;;  %v717_v30 = vld [vmem:[%s1729_s3 + $0x180] sm:$0xff]  ;;  %v714_v34 = vld [vmem:[%s1729_s3 + $0x168] sm:$0xff]  ;;  %v712_v37 = vld [vmem:[%s1729_s3 + $0x158] sm:$0xff] }
 0x13c   : > { %770 = vmatpush1.msra.mxu0 %v675_v48  ;;  %1070 = vmatpush3.msra.mxu1 %v828_v13  ;;  %v713_v35 = vld [vmem:[%s1729_s3 + $0x160] sm:$0xff]  ;;  %v711_v39 = vld [vmem:[%s1729_s3 + $0x150] sm:$0xff]  ;;  %v710_v40 = vld [vmem:[%s1729_s3 + $0x148] sm:$0xff] }
 0x13d   : > { %771 = vmatprep.subr.mxu0 %v674_v51  ;;  %1071 = vmatprep.subr.mxu1 %v843_v15  ;;  %v709_v41 = vld [vmem:[%s1729_s3 + $0x140] sm:$0xff]  ;;  %v708_v44 = vld [vmem:[%s1729_s3 + $0x138] sm:$0xff]  ;;  %v707_v46 = vld [vmem:[%s1729_s3 + $0x130] sm:$0xff] }
 0x13e   : > { %772 = vmatpush1.msra.mxu0 %v673_v54  ;;  %1072 = vmatpush3.msra.mxu1 %v827_v17  ;;  %v651_v45 = vld [vmem:[#allocation2] sm:$0xff]  ;;  %v706_v47 = vld [vmem:[%s1729_s3 + $0x128] sm:$0xff]  ;;  %v704_v49 = vld [vmem:[%s1729_s3 + $0x118] sm:$0xff] }
 0x13f   : > { %773 = vmatprep.subr.mxu0 %v672_v55  ;;  %1073 = vmatprep.subr.mxu1 %v842_v19  ;;  %v705_v43 = vld [vmem:[%s1729_s3 + $0x120] sm:$0xff]  ;;  %v665_v48 = vadd.f32 %v658_v42, %v651_v45  ;;  %v703_v50 = vld [vmem:[%s1729_s3 + $0x110] sm:$0xff]  ;;  %v702_v51 = vld [vmem:[%s1729_s3 + $0x108] sm:$0xff] }
 0x140   : > { %774 = vmatpush1.msra.mxu0 %v671_v58  ;;  %1074 = vmatpush3.msra.mxu1 %v826_v21  ;;  %v701_v52 = vld [vmem:[%s1729_s3 + $0x100] sm:$0xff]  ;;  %v839_v54 = vld [vmem:[%s1731_s5 + $0x98] sm:$0xff]  ;;  %v838_v56 = vld [vmem:[%s1731_s5 + $0x90] sm:$0xff] }
 0x141   : > { %775 = vmatprep.subr.mxu0 %v670_v60  ;;  %1075 = vmatprep.subr.mxu1 %v841_v23  ;;  %v667_v53 = vmax.f32 %v665_v48, 0.0  ;;  %v823_v55 = vld [vmem:[%s1731_s5 + $0x18] sm:$0xff]  ;;  %v822_v57 = vld [vmem:[%s1731_s5 + $0x10] sm:$0xff]  ;;  %v837_v58 = vld [vmem:[%s1731_s5 + $0x88] sm:$0xff] }
 0x142   : > { %776 = vmatpush1.msra.mxu0 %v669_v62  ;;  %1076 = vmatpush3.msra.mxu1 %v825_v25  ;;  %v821_v59 = vld [vmem:[%s1731_s5 + $0x8] sm:$0xff]  ;;  %v836_v60 = vld [vmem:[%s1731_s5 + $0x80] sm:$0xff] }
 0x143   : > { %777 = vmatprep.subr.mxu0 %v732_v0  ;;  %1077 = vmatprep.subr.mxu1 %v840_v27  ;;  %v820_v61 = vld [vmem:[%s1731_s5] sm:$0xff] }
 0x144   : > { %778 = vmatpush2.msra.mxu0 %v731_v2  ;;  %1078 = vmatpush3.msra.mxu1 %v824_v29  ;;  %v733_v62 = vld [vmem:[%s1730_s4] sm:$0x3] }
 0x145   : > { %779 = vmatprep.subr.mxu0 %v730_v4  ;;  %1079 = vmatprep.subr.mxu1 %v839_v54  ;;  %v738_v63 = vrot.slane %v733_v62, %v657_v36  ;;  %v742_v0 = vrot.slane %v733_v62, %v661_v38 }
 0x146   : > { %780 = vmatpush2.msra.mxu0 %v729_v6  ;;  %1080 = vmatpush3.msra.mxu1 %v823_v55 }
 0x147   : > { %781 = vmatprep.subr.mxu0 %v728_v8  ;;  %1081 = vmatprep.subr.mxu1 %v838_v56  ;;  %v1048_v8 = vld [vmem:[%s1732_s6] ss:$0 sm:$0xff] }
 0x148   : > { %782 = vmatpush2.msra.mxu0 %v727_v10  ;;  %1082 = vmatpush3.msra.mxu1 %v822_v57 }
 0x149   : > { %783 = vmatprep.subr.mxu0 %v726_v12  ;;  %1083 = vmatprep.subr.mxu1 %v837_v58 }
 0x14a   : > { %784 = vmatpush2.msra.mxu0 %v725_v14  ;;  %1084 = vmatpush3.msra.mxu1 %v821_v59 }
 0x14b   : > { %785 = vmatprep.subr.mxu0 %v724_v16  ;;  %1085 = vmatprep.subr.mxu1 %v836_v60 }
 0x14c   : > { %786 = vmatpush2.msra.mxu0 %v723_v18  ;;  %1086 = vmatpush3.msra.mxu1 %v820_v61 }
 0x14d   : > { %787 = vmatprep.subr.mxu0 %v722_v20 }
 0x14e   : > { %788 = vmatpush2.msra.mxu0 %v721_v22 }
 0x14f   : > { %789 = vmatprep.subr.mxu0 %v720_v24 }
 0x150   : > { %790 = vmatpush2.msra.mxu0 %v719_v26 }
 0x151   : > { %791 = vmatprep.subr.mxu0 %v718_v28 }
 0x152   : > { %792 = vmatpush2.msra.mxu0 %v717_v30 }
 0x153   : > { %793 = vmatprep.subr.mxu0 %v716_v31 }
 0x154   : > { %794 = vmatpush2.msra.mxu0 %v715_v32 }
 0x155   : > { %795 = vmatprep.subr.mxu0 %v714_v34 }
 0x156   : > { %796 = vmatpush2.msra.mxu0 %v713_v35 }
 0x157   : > { %797 = vmatprep.subr.mxu0 %v712_v37 }
 0x158   : > { %798 = vmatpush2.msra.mxu0 %v711_v39 }
 0x159   : > { %799 = vmatprep.subr.mxu0 %v710_v40 }
 0x15a   : > { %800 = vmatpush2.msra.mxu0 %v709_v41 }
 0x15b   : > { %801 = vmatprep.subr.mxu0 %v708_v44 }
 0x15c   : > { %802 = vmatpush2.msra.mxu0 %v707_v46 }
 0x15d   : > { %803 = vmatprep.subr.mxu0 %v706_v47 }
 0x15e   : > { %804 = vmatpush2.msra.mxu0 %v705_v43 }
 0x15f   : > { %805 = vmatprep.subr.mxu0 %v704_v49 }
 0x160   : > { %806 = vmatpush2.msra.mxu0 %v703_v50 }
 0x161   : > { %807 = vmatprep.subr.mxu0 %v702_v51 }
 0x162   : > { %808 = vmatpush2.msra.mxu0 %v701_v52 }
 0x163   : > { %810 = vmatmul.mubr.f32.vlgmr.msra.gmra.mxu0 %v667_v53 }
 0x223   : > { %v811_v1 = vpop.f32.mrf.mxu0 }
 0x224   : > { %v812_v2 = vadd.f32 %v811_v1, %v738_v63 }
 0x225   : > { %v813_v3 = vpop.f32.mrf.mxu0 }
 0x226   : > { %v816_v4 = vmax.f32 %v812_v2, 0.0  ;;  %v814_v5 = vadd.f32 %v813_v3, %v742_v0 }
 0x228   : > { %818 = vst [vmem:[#allocation3] sm:$0xff] %v816_v4  ;;  %v817_v6 = vmax.f32 %v814_v5, 0.0 }
 0x22a   : > { %819 = vst [vmem:[#allocation3 + $0x8] sm:$0xff] %v817_v6  ;;  %923 = vmatprep.mubr.f32.mxu1 %v817_v6 }
 0x22b   : > { %924 = vmatmul.mubr.f32.vlgmr.msra.gmra.mxu1 %v816_v4 }
 0x2eb   : > { %v1087_v7 = vpop.f32.mrf.mxu1 }
 0x2ed   : > { %v1088_v9 = vpop.f32.mrf.mxu1 }
 0x2ee   : > { %v1089_v10 = vadd.f32 %v1088_v9, %v1087_v7 }
 0x2f0   : > { %v926_v33 = vadd.f32 %v1089_v10, %v1048_v8 }
 0x2f2   : > { %930 = vst.msk [vmem:[%s1733_s7] sm:$0xff] %vm929_vm0, %v926_v33 }
 0x2f3 PF: > { %p1702_p8 = scmp.eq.s32.totalorder %s1037_s30, 4  ;;  %s1175_s23 = smov [#allocation3]  }
 0x2f4   : > { %s948_s24 = sshll.u32 %s1175_s23, 4  ;;  %s949_s24 = int_to_ptr.vmem [resolvable:$true] %s948_s24 }
 0x2f5   : > { %s1122_s25 = scalar_lea.vmem %s949_s24, 256  ;;  %p1129_p12 = scmp.lt.s32.totalorder %s949_s24, %s949_s24 }
 0x2f6   : > { %p1123_p9 = scmp.ne.s32.totalorder %s949_s24, %s1122_s25  ;;  %p1130_p13 = scmp.lt.s32.totalorder %s1122_s25, %s1122_s25 }
 0x2f8   : > { %p1124_p10 = pnand %p1123_p9, %p1702_p8  ;;  %p1131_p0 = por %p1130_p13, %p1129_p12 }
 0x2fa   : > { %p1125_p11 = pneg %p1124_p10 }
 0x2fc   : > { %p1132_p1 = pnand %p1131_p0, %p1125_p11 }
 0x2fe   : > { %1135 = shalt.err (!%p1132_p1)
}
 0x2ff   : > { %1091 = dma.vmem_to_hbm [thread:$0]  (%p1702_p8), %s949_s24, 256, %s1734_s8, [#allocation4]  }
 0x300   : > { %1159 = dma.done.wait (%p1702_p8), [#allocation4], 256  }
 0x301   : > { %1161 = vsyncadd (%p1702_p8), [#allocation4], 4294967040 }
 0x302 PF: > { %s20_s29 = sadd.s32 1, %s1172_s29   ;;  %s1736_s27 = smov %s1168_s28 }
 0x303   : > { %p17_p2 = scmp.ge.s32.totalorder %s20_s29, 7   ;;  %s1737_s28 = smov %s1739_s9 }
 0x305   :  { %19 = sbr.rel (!%p17_p2) target bundleno = 2 (0x2), region = 99 }
 0x30a   :  { %968 = vsyncpa [#allocation4], 1 }
 0x30b   :  { %970 = vsyncpa [#allocation4 + $0x1], 1 }

</bundles_post_ra>
